<compile_context>
chip_gen: v6e
topology: v6e:2x2x1
jax: 0.10.0
libtpu: 0.0.40
codegen_flags: <defaults>
</compile_context>

<pallas_src>
import math

import jax
import jax.numpy as jnp
from jax.experimental import pallas as pl
from jax.experimental.pallas import tpu as pltpu


def _round_up(x, m):
    return ((x + m - 1) // m) * m


def _lane_pack_factor(latent_dim, obs_dim, lane=128):
    """Smallest P with P*latent_dim and P*obs_dim both multiples of `lane`."""
    p_in = lane // math.gcd(latent_dim, lane)
    p_out = lane // math.gcd(obs_dim, lane)
    return (p_in * p_out) // math.gcd(p_in, p_out)  # lcm


def _decoder_kernel(x_ref, w1_ref, b1_ref, w2_ref, b2_ref, o_ref):
    # x_ref : (tile_g, P*latent_dim)    VMEM row tile (lane-packed rows)
    # w1_ref: (P*latent_dim, P*nhidden) VMEM, block-diagonal, resident
    # b1_ref: (1, P*nhidden)            VMEM
    # w2_ref: (P*nhidden, P*obs_dim)    VMEM, block-diagonal, resident
    # b2_ref: (1, P*obs_dim)            VMEM
    # o_ref : (tile_g, P*obs_dim)       VMEM (128-lane multiple -> unmasked vst)
    h = jnp.dot(x_ref[...], w1_ref[...], preferred_element_type=jnp.float32)
    h = jnp.maximum(h + b1_ref[...], 0.0)          # bias + ReLU on VPU
    y = jnp.dot(h, w2_ref[...], preferred_element_type=jnp.float32)
    o_ref[...] = (y + b2_ref[...]).astype(o_ref.dtype)


def latent_ode_decoder(data, w1, b1, w2, b2, *, max_tile_rows=1024):
    """data: (T, B, latent_dim) f32. Returns (B, T, obs_dim) f32.

    w1: (nhidden, latent_dim), b1: (nhidden,)   -- PyTorch Linear layout
    w2: (obs_dim, nhidden),    b2: (obs_dim,)
    max_tile_rows: packed rows per grid step (1024 -> ~1.5 MiB HBM/step).
    """
    T, B, latent_dim = data.shape
    nhidden = w1.shape[0]
    obs_dim = w2.shape[0]

    # ---- lane-packing factor ------------------------------------------------
    pack = _lane_pack_factor(latent_dim, obs_dim)
    # Block-diagonal weights stay resident in VMEM; fall back to no packing if
    # they would be too large (large feature dims do not need packing anyway).
    bd_bytes = 4 * pack * pack * (latent_dim * nhidden + nhidden * obs_dim)
    if bd_bytes > 8 * 1024 * 1024:
        pack = 1

    M = T * B
    n_packed = -(-M // pack)           # number of packed rows
    M_pad = n_packed * pack

    # Natural-layout flat slab (zero-copy reshape; no input HBM transpose).
    x2d = data.reshape(M, latent_dim)
    if M_pad != M:
        # Pad rows so the packed reshape is exact; padded results are sliced
        # off after the kernel (safe: the op is purely row-wise).
        x2d = jnp.pad(x2d, ((0, M_pad - M), (0, 0)))
    x_packed = x2d.reshape(n_packed, pack * latent_dim)

    # Block-diagonal weights (pack copies of the transposed weight on the
    # diagonal) and lane-tiled biases, built once in the wrapper.
    eye = jnp.eye(pack, dtype=w1.dtype)
    w1_bd = jnp.kron(eye, jnp.transpose(w1))           # (P*L, P*H)
    w2_bd = jnp.kron(eye, jnp.transpose(w2))           # (P*H, P*O)
    b1_bd = jnp.tile(b1, pack).reshape(1, pack * nhidden)
    b2_bd = jnp.tile(b2, pack).reshape(1, pack * obs_dim)

    # ---- row tiling -----------------------------------------------------------
    tile_g = min(max_tile_rows, n_packed)
    if n_packed > 1:
        # Keep >= 2 grid steps so both v7x TensorCores get work, with the
        # sublane dim a multiple of 8 (BlockSpec legality); otherwise the tile
        # equals the full dim, which is always legal.
        two_step = _round_up(pl.cdiv(n_packed, 2), 8)
        if two_step < n_packed:
            tile_g = min(tile_g, two_step)
    grid = (pl.cdiv(n_packed, tile_g),)

    in_lanes = pack * latent_dim
    hid_lanes = pack * nhidden
    out_lanes = pack * obs_dim

    out_packed = pl.pallas_call(
        _decoder_kernel,
        out_shape=jax.ShapeDtypeStruct((n_packed, out_lanes), jnp.float32),
        grid_spec=pltpu.PrefetchScalarGridSpec(
            num_scalar_prefetch=0,
            grid=grid,
            in_specs=[
                pl.BlockSpec((tile_g, in_lanes), lambda i: (i, 0)),
                pl.BlockSpec((in_lanes, hid_lanes), lambda i: (0, 0)),
                pl.BlockSpec((1, hid_lanes), lambda i: (0, 0)),
                pl.BlockSpec((hid_lanes, out_lanes), lambda i: (0, 0)),
                pl.BlockSpec((1, out_lanes), lambda i: (0, 0)),
            ],
            out_specs=pl.BlockSpec((tile_g, out_lanes), lambda i: (i, 0)),
        ),
        compiler_params=pltpu.CompilerParams(
            dimension_semantics=("parallel",),
            vmem_limit_bytes=32 * 1024 * 1024,
        ),
    )(x_packed, w1_bd, b1_bd, w2_bd, b2_bd)

    # Unpack (zero-copy), drop padded rows, and do the single small layout
    # pass on the smallest tensor: (T, B, obs) -> (B, T, obs).
    out2d = out_packed.reshape(M_pad, obs_dim)[:M]
    return jnp.transpose(out2d.reshape(T, B, obs_dim), (1, 0, 2))


def _ref_forward(data, w1, b1, w2, b2):
    x = jnp.transpose(data, (1, 0, 2))
    h = jnp.maximum(x @ w1.T + b1, 0.0)
    return h @ w2.T + b2


if __name__ == "__main__":
    # Small shapes consistent with the module's forward pass.
    T, B = 8, 2            # sequence length, batch
    latent_dim = 8
    nhidden = 32
    obs_dim = 4

    key = jax.random.PRNGKey(0)
    k_data, k_w1, k_b1, k_w2, k_b2 = jax.random.split(key, 5)

    data = jax.random.normal(k_data, (T, B, latent_dim), dtype=jnp.float32)

    # Deterministic parameter init (PyTorch-Linear-style uniform bounds).
    bound1 = 1.0 / (latent_dim ** 0.5)
    w1 = jax.random.uniform(k_w1, (nhidden, latent_dim), jnp.float32,
                            -bound1, bound1)
    b1 = jax.random.uniform(k_b1, (nhidden,), jnp.float32, -bound1, bound1)
    bound2 = 1.0 / (nhidden ** 0.5)
    w2 = jax.random.uniform(k_w2, (obs_dim, nhidden), jnp.float32,
                            -bound2, bound2)
    b2 = jax.random.uniform(k_b2, (obs_dim,), jnp.float32, -bound2, bound2)

    fwd = jax.jit(latent_ode_decoder)
    out = jax.block_until_ready(fwd(data, w1, b1, w2, b2))

    ref = _ref_forward(data, w1, b1, w2, b2)
    assert out.shape == (B, T, obs_dim)
    assert jnp.allclose(out, ref, atol=1e-4, rtol=1e-5), "mismatch vs reference"

    print("KERNEL_OK")
</pallas_src>

<mosaic_0001>
module attributes {stable_mosaic.version = 11 : i64} {
  func.func @_decoder_kernel(%arg0: i32, %arg1: memref<1x256xf32, #tpu.memory_space<vmem>>, %arg2: memref<256x1024xf32, #tpu.memory_space<vmem>>, %arg3: memref<1x1024xf32, #tpu.memory_space<vmem>>, %arg4: memref<1024x128xf32, #tpu.memory_space<vmem>>, %arg5: memref<1x128xf32, #tpu.memory_space<vmem>>, %arg6: memref<1x128xf32, #tpu.memory_space<vmem>>) attributes {dimension_semantics = [#tpu.dimension_semantics<parallel>], iteration_bounds = array<i64: 1>, scalar_prefetch = 0 : i64, scratch_operands = 0 : i64, tpu.core_type = #tpu.core_type<tc>, window_params = [{transform_indices = @transform_0, window_bounds = array<i64: 1, 256>}, {pipeline_mode = #tpu.pipeline_mode<synchronous>, transform_indices = @transform_1, window_bounds = array<i64: 256, 1024>}, {pipeline_mode = #tpu.pipeline_mode<synchronous>, transform_indices = @transform_2, window_bounds = array<i64: 1, 1024>}, {pipeline_mode = #tpu.pipeline_mode<synchronous>, transform_indices = @transform_3, window_bounds = array<i64: 1024, 128>}, {pipeline_mode = #tpu.pipeline_mode<synchronous>, transform_indices = @transform_4, window_bounds = array<i64: 1, 128>}, {transform_indices = @transform_5, window_bounds = array<i64: 1, 128>}]} {
    %c0 = arith.constant 0 : index
    %c0_0 = arith.constant 0 : index
    %0 = vector.load %arg1[%c0, %c0_0] : memref<1x256xf32, #tpu.memory_space<vmem>>, vector<1x256xf32>
    %c0_1 = arith.constant 0 : index
    %c0_2 = arith.constant 0 : index
    %1 = vector.load %arg2[%c0_1, %c0_2] : memref<256x1024xf32, #tpu.memory_space<vmem>>, vector<256x1024xf32>
    %cst = arith.constant dense<0.000000e+00> : vector<1x1024xf32>
    %2 = tpu.matmul %0, %1, %cst {dimension_numbers = #tpu.dot_dimension_numbers<[1], [0], [0], [1], [0, 0, 1, 1], [], []>} : vector<1x256xf32>, vector<256x1024xf32>, vector<1x1024xf32> -> vector<1x1024xf32>
    %c0_3 = arith.constant 0 : index
    %c0_4 = arith.constant 0 : index
    %3 = vector.load %arg3[%c0_3, %c0_4] : memref<1x1024xf32, #tpu.memory_space<vmem>>, vector<1x1024xf32>
    %4 = arith.addf %2, %3 : vector<1x1024xf32>
    %cst_5 = arith.constant 0.000000e+00 : f32
    %5 = vector.broadcast %cst_5 : f32 to vector<1x1024xf32>
    %6 = arith.maximumf %4, %5 : vector<1x1024xf32>
    %c0_6 = arith.constant 0 : index
    %c0_7 = arith.constant 0 : index
    %7 = vector.load %arg4[%c0_6, %c0_7] : memref<1024x128xf32, #tpu.memory_space<vmem>>, vector<1024x128xf32>
    %cst_8 = arith.constant dense<0.000000e+00> : vector<1x128xf32>
    %8 = tpu.matmul %6, %7, %cst_8 {dimension_numbers = #tpu.dot_dimension_numbers<[1], [0], [0], [1], [0, 0, 1, 1], [], []>} : vector<1x1024xf32>, vector<1024x128xf32>, vector<1x128xf32> -> vector<1x128xf32>
    %c0_9 = arith.constant 0 : index
    %c0_10 = arith.constant 0 : index
    %9 = vector.load %arg5[%c0_9, %c0_10] : memref<1x128xf32, #tpu.memory_space<vmem>>, vector<1x128xf32>
    %10 = arith.addf %8, %9 : vector<1x128xf32>
    %c0_11 = arith.constant 0 : index
    %c0_12 = arith.constant 0 : index
    %11 = vector.load %arg6[%c0_11, %c0_12] : memref<1x128xf32, #tpu.memory_space<vmem>>, vector<1x128xf32>
    tpu.vector_store %arg6[%c0_11, %c0_12], %10 {strides = array<i32>} : memref<1x128xf32, #tpu.memory_space<vmem>>, vector<1x128xf32>,
    return
  }
  func.func @transform_0(%arg0: i32) -> (i32, i32) {
    %c0_i32 = arith.constant 0 : i32
    %c0_i32_0 = arith.constant 0 : i32
    return %arg0, %c0_i32 : i32, i32
  }
  func.func @transform_1(%arg0: i32) -> (i32, i32) {
    %c0_i32 = arith.constant 0 : i32
    %c0_i32_0 = arith.constant 0 : i32
    %c0_i32_1 = arith.constant 0 : i32
    return %c0_i32, %c0_i32_0 : i32, i32
  }
  func.func @transform_2(%arg0: i32) -> (i32, i32) {
    %c0_i32 = arith.constant 0 : i32
    %c0_i32_0 = arith.constant 0 : i32
    %c0_i32_1 = arith.constant 0 : i32
    return %c0_i32, %c0_i32_0 : i32, i32
  }
  func.func @transform_3(%arg0: i32) -> (i32, i32) {
    %c0_i32 = arith.constant 0 : i32
    %c0_i32_0 = arith.constant 0 : i32
    %c0_i32_1 = arith.constant 0 : i32
    return %c0_i32, %c0_i32_0 : i32, i32
  }
  func.func @transform_4(%arg0: i32) -> (i32, i32) {
    %c0_i32 = arith.constant 0 : i32
    %c0_i32_0 = arith.constant 0 : i32
    %c0_i32_1 = arith.constant 0 : i32
    return %c0_i32, %c0_i32_0 : i32, i32
  }
  func.func @transform_5(%arg0: i32) -> (i32, i32) {
    %c0_i32 = arith.constant 0 : i32
    %c0_i32_0 = arith.constant 0 : i32
    return %arg0, %c0_i32 : i32, i32
  }
}

</mosaic_0001>

<bundles_post_ra>
// kernel: tile.13
= control target key start
LH: loop header
LB: loop body
LE: loop exit
PB: predicated region body
PF: predicated region fallthrough
CT: control target
= control target key end

     0   :  { %s40_s0 = inlined_call_operand.vmem [shape: f32[32], index: 0, kind: input, shape index: {}]   ;;  %s41_s1 = inlined_call_operand.vmem [shape: f32[32,32], index: 1, kind: output, shape index: {}]  }
   0x1   :  { %v4_v0 = vld [vmem:[%s40_s0] ss:$0 sm:$0xff] }
   0x2   :  { %5 = vst [vmem:[%s41_s1] sm:$0xff] %v4_v0  ;;  %12 = vst [vmem:[%s41_s1 + $0x8] sm:$0xff] %v4_v0 }
   0x3   :  { %13 = vst [vmem:[%s41_s1 + $0x10] sm:$0xff] %v4_v0  ;;  %14 = vst [vmem:[%s41_s1 + $0x18] sm:$0xff] %v4_v0 }

// kernel: tile.14
= control target key start
LH: loop header
LB: loop body
LE: loop exit
PB: predicated region body
PF: predicated region fallthrough
CT: control target
= control target key end

     0   :  { %s102_s8 = smov 96   ;;  %vm3_vm0 = vcmask 261120   ;;  %s104_s15 = smov 64   ;;  %vm10_vm1 = vcmask 1048320   ;;  %vm17_vm2 = vcmask 785920   ;;  %vm24_vm3 = vcmask 523520   ;;  %s151_s0 = inlined_call_operand.vmem [shape: f32[32,32], index: 0, kind: input, shape index: {}]   ;;  %s152_s1 = inlined_call_operand.vmem [shape: f32[1,1024], index: 1, kind: output, shape index: {}]  }
   0x1   :  { %v89_v0 = vld [vmem:[%s151_s0 + $0x3] ss:$4 sm:$0xff]   ;;  %v91_v1 = vld [vmem:[%s151_s0 + $0x1] ss:$4 sm:$0xff]   ;;  %v2_v2 = vld [vmem:[%s151_s0] ss:$4 sm:$0xff]  }
   0x2   :  { %8 = vrot.lane.b32.xlu0 %v89_v0, %s102_s8  ;;  %v90_v3 = vld [vmem:[%s151_s0 + $0x2] ss:$4 sm:$0xff]   ;;  %s103_s0 = smov 32   ;;  %4 = vst.msk [vmem:[#allocation0] ss:$8 sm:$0xf] %vm3_vm0, %v2_v2  }
   0x3   :  { %22 = vrot.lane.b32.xlu1 %v91_v1, %s103_s0  ;;  %5 = vst.msk [vmem:[#allocation0] ss:$8 sm:$0xf0] %vm3_vm0, %v2_v2  }
   0x6   :  { %15 = vrot.lane.b32.xlu0 %v90_v3, %s104_s15 }
  0x74   :  { %v9_v4 = vpop.permute.xlu0 %8  }
  0x75   :  { %11 = vst.msk [vmem:[#allocation0] ss:$8 sm:$0xf] %vm10_vm1, %v9_v4   ;;  %12 = vst.msk [vmem:[#allocation0] ss:$8 sm:$0xf0] %vm10_vm1, %v9_v4   ;;  %v23_v5 = vpop.permute.xlu1 %22  }
  0x78   :  { %v16_v6 = vpop.permute.xlu0 %15  }
  0x79   :  { %18 = vst.msk [vmem:[#allocation0] ss:$8 sm:$0xf] %vm17_vm2, %v16_v6   ;;  %19 = vst.msk [vmem:[#allocation0] ss:$8 sm:$0xf0] %vm17_vm2, %v16_v6  }
  0x7a   :  { %25 = vst.msk [vmem:[#allocation0] ss:$8 sm:$0xf] %vm24_vm3, %v23_v5   ;;  %26 = vst.msk [vmem:[#allocation0] ss:$8 sm:$0xf0] %vm24_vm3, %v23_v5  }
  0x81   :  { %v31_v7 = vld [vmem:[#allocation0] sm:$0x1]  ;;  %v36_v8 = vld [vmem:[#allocation0 + $0x8] sm:$0x1]  ;;  %v42_v9 = vld [vmem:[#allocation0 + $0x10] sm:$0x1] }
  0x82   :  { %34 = vst [vmem:[%s152_s1] sm:$0x1] %v31_v7  ;;  %92 = vst [vmem:[%s152_s1 + $0x1] sm:$0x1] %v36_v8  ;;  %v49_v10 = vld [vmem:[#allocation0 + $0x18] sm:$0x1] }
  0x83   :  { %93 = vst [vmem:[%s152_s1 + $0x2] sm:$0x1] %v42_v9  ;;  %v56_v11 = vld [vmem:[#allocation0 + $0x20] sm:$0x1]  ;;  %v63_v12 = vld [vmem:[#allocation0 + $0x28] sm:$0x1] }
  0x84   :  { %94 = vst [vmem:[%s152_s1 + $0x3] sm:$0x1] %v49_v10  ;;  %95 = vst [vmem:[%s152_s1 + $0x4] sm:$0x1] %v56_v11  ;;  %v70_v13 = vld [vmem:[#allocation0 + $0x30] sm:$0x1] }
  0x85   :  { %96 = vst [vmem:[%s152_s1 + $0x5] sm:$0x1] %v63_v12  ;;  %v77_v14 = vld [vmem:[#allocation0 + $0x38] sm:$0x1]  ;;  %97 = vst [vmem:[%s152_s1 + $0x6] sm:$0x1] %v70_v13 }
  0x86   :  { %98 = vst [vmem:[%s152_s1 + $0x7] sm:$0x1] %v77_v14 }

// kernel: tile.18
= control target key start
LH: loop header
LB: loop body
LE: loop exit
PB: predicated region body
PF: predicated region fallthrough
CT: control target
= control target key end

     0   :  { %s40_s0 = inlined_call_operand.vmem [shape: f32[4], index: 0, kind: input, shape index: {}]   ;;  %s41_s1 = inlined_call_operand.vmem [shape: f32[32,4], index: 1, kind: output, shape index: {}]  }
   0x1   :  { %v4_v0 = vld [vmem:[%s40_s0] ss:$0 sm:$0xff] }
   0x2   :  { %5 = vst [vmem:[%s41_s1] sm:$0xff] %v4_v0  ;;  %12 = vst [vmem:[%s41_s1 + $0x8] sm:$0xff] %v4_v0 }
   0x3   :  { %13 = vst [vmem:[%s41_s1 + $0x10] sm:$0xff] %v4_v0  ;;  %14 = vst [vmem:[%s41_s1 + $0x18] sm:$0xff] %v4_v0 }

// kernel: tile.19
= control target key start
LH: loop header
LB: loop body
LE: loop exit
PB: predicated region body
PF: predicated region fallthrough
CT: control target
= control target key end

     0   :  { %s261_s10 = smov 124   ;;  %s262_s11 = smov 116   ;;  %vm3_vm0 = vcmask 31744   ;;  %vm9_vm1 = vcmask 1048544   ;;  %vm15_vm2 = vcmask 1015744   ;;  %vm21_vm3 = vcmask 982944   ;;  %s401_s0 = inlined_call_operand.vmem [shape: f32[32,4], index: 0, kind: input, shape index: {}]   ;;  %s402_s1 = inlined_call_operand.vmem [shape: f32[1,128], index: 1, kind: output, shape index: {}]  }
   0x1   :  { %v199_v0 = vld [vmem:[%s401_s0 + $0x1f] sm:$0x1]   ;;  %v201_v1 = vld [vmem:[%s401_s0 + $0x1d] sm:$0x1]   ;;  %v200_v2 = vld [vmem:[%s401_s0 + $0x1e] sm:$0x1]  }
   0x2   :  { %7 = vrot.lane.b32.xlu0 %v199_v0, %s261_s10  ;;  %19 = vrot.lane.b32.xlu1 %v201_v1, %s262_s11  ;;  %v202_v3 = vld [vmem:[%s401_s0 + $0x1c] sm:$0x1]   ;;  %s263_s16 = smov 120   ;;  %s264_s17 = smov 112   ;;  %v203_v4 = vld [vmem:[%s401_s0 + $0x1b] sm:$0x1]  }
   0x3   :  { %v204_v5 = vld [vmem:[%s401_s0 + $0x1a] sm:$0x1]   ;;  %s265_s22 = smov 108   ;;  %s266_s23 = smov 104   ;;  %v205_v6 = vld [vmem:[%s401_s0 + $0x19] sm:$0x1]  }
   0x4   :  { %v206_v7 = vld [vmem:[%s401_s0 + $0x18] sm:$0x1]   ;;  %s267_s28 = smov 100   ;;  %s268_s29 = smov 96   ;;  %v207_v8 = vld [vmem:[%s401_s0 + $0x17] sm:$0x1]  }
   0x5   :  { %v208_v9 = vld [vmem:[%s401_s0 + $0x16] sm:$0x1]   ;;  %v2_v10 = vld [vmem:[%s401_s0] sm:$0x1]   ;;  %s269_s7 = smov 92   ;;  %s270_s8 = smov 88  }
   0x6   :  { %13 = vrot.lane.b32.xlu0 %v200_v2, %s263_s16  ;;  %25 = vrot.lane.b32.xlu1 %v202_v3, %s264_s17  ;;  %4 = vst.msk [vmem:[#allocation0] sm:$0x1] %vm3_vm0, %v2_v10   ;;  %v209_v11 = vld [vmem:[%s401_s0 + $0x15] sm:$0x1]   ;;  %v210_v12 = vld [vmem:[%s401_s0 + $0x14] sm:$0x1]  }
   0x7   :  { %s271_s13 = smov 84   ;;  %s272_s14 = smov 80   ;;  %v211_v13 = vld [vmem:[%s401_s0 + $0x13] sm:$0x1]   ;;  %v212_v14 = vld [vmem:[%s401_s0 + $0x12] sm:$0x1]  }
   0x8   :  { %s273_s19 = smov 76   ;;  %s274_s20 = smov 72   ;;  %v213_v15 = vld [vmem:[%s401_s0 + $0x11] sm:$0x1]   ;;  %v214_v16 = vld [vmem:[%s401_s0 + $0x10] sm:$0x1]  }
   0x9   :  { %s275_s25 = smov 68   ;;  %s276_s26 = smov 64   ;;  %v215_v17 = vld [vmem:[%s401_s0 + $0xf] sm:$0x1]   ;;  %v216_v18 = vld [vmem:[%s401_s0 + $0xe] sm:$0x1]  }
   0xa   :  { %31 = vrot.lane.b32.xlu0 %v203_v4, %s265_s22  ;;  %37 = vrot.lane.b32.xlu1 %v204_v5, %s266_s23  ;;  %s277_s2 = smov 60   ;;  %s278_s3 = smov 56   ;;  %v217_v19 = vld [vmem:[%s401_s0 + $0xd] sm:$0x1]   ;;  %v218_v20 = vld [vmem:[%s401_s0 + $0xc] sm:$0x1]  }
   0xb   :  { %s280_s9 = smov 48   ;;  %v219_v21 = vld [vmem:[%s401_s0 + $0xb] sm:$0x1]   ;;  %v220_v22 = vld [vmem:[%s401_s0 + $0xa] sm:$0x1]   ;;  %s282_s15 = smov 40  }
   0xc   :  { %v221_v23 = vld [vmem:[%s401_s0 + $0x9] sm:$0x1]   ;;  %v222_v24 = vld [vmem:[%s401_s0 + $0x8] sm:$0x1]   ;;  %s284_s21 = smov 32   ;;  %s286_s27 = smov 24  }
   0xd   :  { %v223_v25 = vld [vmem:[%s401_s0 + $0x7] sm:$0x1]   ;;  %v224_v26 = vld [vmem:[%s401_s0 + $0x6] sm:$0x1]   ;;  %v225_v27 = vld [vmem:[%s401_s0 + $0x5] sm:$0x1]  }
   0xe   :  { %43 = vrot.lane.b32.xlu0 %v205_v6, %s267_s28  ;;  %49 = vrot.lane.b32.xlu1 %v206_v7, %s268_s29  ;;  %v226_v28 = vld [vmem:[%s401_s0 + $0x4] sm:$0x1]   ;;  %s288_s4 = smov 16   ;;  %v227_v29 = vld [vmem:[%s401_s0 + $0x3] sm:$0x1]   ;;  %s290_s10 = smov 8  }
   0xf   :  { %v228_v30 = vld [vmem:[%s401_s0 + $0x2] sm:$0x1]   ;;  %v229_v31 = vld [vmem:[%s401_s0 + $0x1] sm:$0x1]   ;;  %s291_s0 = smov 4   ;;  %vm27_vm4 = vcmask 950144  }
  0x10   :  { %vm33_vm5 = vcmask 917344   ;;  %vm39_vm6 = vcmask 884544   ;;  %vm45_vm7 = vcmask 851744   ;;  %vm51_vm8 = vcmask 818944  }
  0x11   :  { %vm57_vm9 = vcmask 786144   ;;  %vm63_vm10 = vcmask 753344   ;;  %vm69_vm11 = vcmask 720544   ;;  %vm75_vm12 = vcmask 687744  }
  0x12   :  { %55 = vrot.lane.b32.xlu0 %v207_v8, %s269_s7  ;;  %61 = vrot.lane.b32.xlu1 %v208_v9, %s270_s8  ;;  %s279_s8 = smov 52   ;;  %vm81_vm13 = vcmask 654944   ;;  %vm87_vm14 = vcmask 622144   ;;  %vm93_vm15 = vcmask 589344   ;;  %vm99_vm0 = vcmask 556544  }
  0x16   :  { %67 = vrot.lane.b32.xlu0 %v209_v11, %s271_s13  ;;  %73 = vrot.lane.b32.xlu1 %v210_v12, %s272_s14  ;;  %s281_s14 = smov 44  }
  0x1a   :  { %79 = vrot.lane.b32.xlu0 %v211_v13, %s273_s19  ;;  %85 = vrot.lane.b32.xlu1 %v212_v14, %s274_s20  ;;  %s283_s20 = smov 36  }
  0x1e   :  { %91 = vrot.lane.b32.xlu0 %v213_v15, %s275_s25  ;;  %97 = vrot.lane.b32.xlu1 %v214_v16, %s276_s26  ;;  %s285_s26 = smov 28  }
  0x22   :  { %103 = vrot.lane.b32.xlu0 %v215_v17, %s277_s2  ;;  %109 = vrot.lane.b32.xlu1 %v216_v18, %s278_s3  ;;  %s287_s3 = smov 20  }
  0x26   :  { %115 = vrot.lane.b32.xlu0 %v217_v19, %s279_s8  ;;  %121 = vrot.lane.b32.xlu1 %v218_v20, %s280_s9  ;;  %s289_s9 = smov 12  }
  0x2a   :  { %127 = vrot.lane.b32.xlu0 %v219_v21, %s281_s14  ;;  %133 = vrot.lane.b32.xlu1 %v220_v22, %s282_s15 }
  0x2e   :  { %139 = vrot.lane.b32.xlu0 %v221_v23, %s283_s20  ;;  %145 = vrot.lane.b32.xlu1 %v222_v24, %s284_s21 }
  0x32   :  { %151 = vrot.lane.b32.xlu0 %v223_v25, %s285_s26  ;;  %157 = vrot.lane.b32.xlu1 %v224_v26, %s286_s27 }
  0x36   :  { %163 = vrot.lane.b32.xlu0 %v225_v27, %s287_s3  ;;  %169 = vrot.lane.b32.xlu1 %v226_v28, %s288_s4 }
  0x3a   :  { %175 = vrot.lane.b32.xlu0 %v227_v29, %s289_s9  ;;  %181 = vrot.lane.b32.xlu1 %v228_v30, %s290_s10 }
  0x3e   :  { %187 = vrot.lane.b32.xlu0 %v229_v31, %s291_s0 }
  0x74   :  { %v8_v32 = vpop.permute.xlu0 %7   ;;  %v20_v33 = vpop.permute.xlu1 %19  }
  0x75   :  { %10 = vst.msk [vmem:[#allocation0] sm:$0x1] %vm9_vm1, %v8_v32   ;;  %vm105_vm1 = vcmask 523744  }
  0x78   :  { %v14_v34 = vpop.permute.xlu0 %13   ;;  %v26_v35 = vpop.permute.xlu1 %25  }
  0x79   :  { %16 = vst.msk [vmem:[#allocation0] sm:$0x1] %vm15_vm2, %v14_v34   ;;  %vm111_vm2 = vcmask 490944  }
  0x7a   :  { %22 = vst.msk [vmem:[#allocation0] sm:$0x1] %vm21_vm3, %v20_v33   ;;  %vm117_vm3 = vcmask 458144  }
  0x7b   :  { %28 = vst.msk [vmem:[#allocation0] sm:$0x1] %vm27_vm4, %v26_v35   ;;  %vm123_vm4 = vcmask 425344  }
  0x7c   :  { %v32_v36 = vpop.permute.xlu0 %31   ;;  %v38_v37 = vpop.permute.xlu1 %37  }
  0x7d   :  { %34 = vst.msk [vmem:[#allocation0] sm:$0x1] %vm33_vm5, %v32_v36   ;;  %vm129_vm5 = vcmask 392544  }
  0x7e   :  { %40 = vst.msk [vmem:[#allocation0] sm:$0x1] %vm39_vm6, %v38_v37   ;;  %vm135_vm6 = vcmask 359744  }
  0x80   :  { %v44_v38 = vpop.permute.xlu0 %43   ;;  %v50_v39 = vpop.permute.xlu1 %49  }
  0x81   :  { %46 = vst.msk [vmem:[#allocation0] sm:$0x1] %vm45_vm7, %v44_v38   ;;  %vm141_vm7 = vcmask 326944  }
  0x82   :  { %52 = vst.msk [vmem:[#allocation0] sm:$0x1] %vm51_vm8, %v50_v39   ;;  %vm147_vm8 = vcmask 294144  }
  0x84   :  { %v56_v40 = vpop.permute.xlu0 %55   ;;  %v62_v41 = vpop.permute.xlu1 %61  }
  0x85   :  { %58 = vst.msk [vmem:[#allocation0] sm:$0x1] %vm57_vm9, %v56_v40   ;;  %vm153_vm9 = vcmask 261344  }
  0x86   :  { %64 = vst.msk [vmem:[#allocation0] sm:$0x1] %vm63_vm10, %v62_v41   ;;  %vm159_vm10 = vcmask 228544  }
  0x88   :  { %v68_v42 = vpop.permute.xlu0 %67   ;;  %v74_v43 = vpop.permute.xlu1 %73  }
  0x89   :  { %70 = vst.msk [vmem:[#allocation0] sm:$0x1] %vm69_vm11, %v68_v42   ;;  %vm165_vm11 = vcmask 195744  }
  0x8a   :  { %76 = vst.msk [vmem:[#allocation0] sm:$0x1] %vm75_vm12, %v74_v43   ;;  %vm171_vm12 = vcmask 162944  }
  0x8c   :  { %v80_v44 = vpop.permute.xlu0 %79   ;;  %v86_v45 = vpop.permute.xlu1 %85  }
  0x8d   :  { %82 = vst.msk [vmem:[#allocation0] sm:$0x1] %vm81_vm13, %v80_v44   ;;  %vm177_vm13 = vcmask 130144  }
  0x8e   :  { %88 = vst.msk [vmem:[#allocation0] sm:$0x1] %vm87_vm14, %v86_v45   ;;  %vm183_vm14 = vcmask 97344  }
  0x90   :  { %v92_v46 = vpop.permute.xlu0 %91   ;;  %v98_v47 = vpop.permute.xlu1 %97  }
  0x91   :  { %94 = vst.msk [vmem:[#allocation0] sm:$0x1] %vm93_vm15, %v92_v46   ;;  %vm189_vm15 = vcmask 64544  }
  0x92   :  { %100 = vst.msk [vmem:[#allocation0] sm:$0x1] %vm99_vm0, %v98_v47  }
  0x94   :  { %v104_v48 = vpop.permute.xlu0 %103   ;;  %v110_v49 = vpop.permute.xlu1 %109  }
  0x95   :  { %106 = vst.msk [vmem:[#allocation0] sm:$0x1] %vm105_vm1, %v104_v48  }
  0x96   :  { %112 = vst.msk [vmem:[#allocation0] sm:$0x1] %vm111_vm2, %v110_v49  }
  0x98   :  { %v116_v50 = vpop.permute.xlu0 %115   ;;  %v122_v51 = vpop.permute.xlu1 %121  }
  0x99   :  { %118 = vst.msk [vmem:[#allocation0] sm:$0x1] %vm117_vm3, %v116_v50  }
  0x9a   :  { %124 = vst.msk [vmem:[#allocation0] sm:$0x1] %vm123_vm4, %v122_v51  }
  0x9c   :  { %v128_v52 = vpop.permute.xlu0 %127   ;;  %v134_v53 = vpop.permute.xlu1 %133  }
  0x9d   :  { %130 = vst.msk [vmem:[#allocation0] sm:$0x1] %vm129_vm5, %v128_v52  }
  0x9e   :  { %136 = vst.msk [vmem:[#allocation0] sm:$0x1] %vm135_vm6, %v134_v53  }
  0xa0   :  { %v140_v54 = vpop.permute.xlu0 %139   ;;  %v146_v55 = vpop.permute.xlu1 %145  }
  0xa1   :  { %142 = vst.msk [vmem:[#allocation0] sm:$0x1] %vm141_vm7, %v140_v54  }
  0xa2   :  { %148 = vst.msk [vmem:[#allocation0] sm:$0x1] %vm147_vm8, %v146_v55  }
  0xa4   :  { %v152_v56 = vpop.permute.xlu0 %151   ;;  %v158_v57 = vpop.permute.xlu1 %157  }
  0xa5   :  { %154 = vst.msk [vmem:[#allocation0] sm:$0x1] %vm153_vm9, %v152_v56  }
  0xa6   :  { %160 = vst.msk [vmem:[#allocation0] sm:$0x1] %vm159_vm10, %v158_v57  }
  0xa8   :  { %v164_v58 = vpop.permute.xlu0 %163   ;;  %v170_v59 = vpop.permute.xlu1 %169  }
  0xa9   :  { %166 = vst.msk [vmem:[#allocation0] sm:$0x1] %vm165_vm11, %v164_v58  }
  0xaa   :  { %172 = vst.msk [vmem:[#allocation0] sm:$0x1] %vm171_vm12, %v170_v59  }
  0xac   :  { %v176_v60 = vpop.permute.xlu0 %175   ;;  %v182_v61 = vpop.permute.xlu1 %181  }
  0xad   :  { %178 = vst.msk [vmem:[#allocation0] sm:$0x1] %vm177_vm13, %v176_v60  }
  0xae   :  { %184 = vst.msk [vmem:[#allocation0] sm:$0x1] %vm183_vm14, %v182_v61  }
  0xb0   :  { %v188_v62 = vpop.permute.xlu0 %187  }
  0xb1   :  { %190 = vst.msk [vmem:[#allocation0] sm:$0x1] %vm189_vm15, %v188_v62  }
  0xb8   :  { %v195_v63 = vld [vmem:[#allocation0] sm:$0x1] }
  0xb9   :  { %198 = vst [vmem:[%s402_s1] sm:$0x1] %v195_v63 }

// kernel: latent_ode_decoder.1
= control target key start
LH: loop header
LB: loop body
LE: loop exit
PB: predicated region body
PF: predicated region fallthrough
CT: control target
= control target key end

     0   :  { %s2410_s1 = inlined_call_operand.vmem [shape: f32[256,1024], index: 1, kind: input, shape index: {}]   ;;  %s2411_s0 = inlined_call_operand.vmem [shape: f32[1,256], index: 0, kind: input, shape index: {}]   ;;  %s2412_s3 = inlined_call_operand.vmem [shape: f32[1024,128], index: 3, kind: input, shape index: {}]   ;;  %s2413_s2 = inlined_call_operand.vmem [shape: f32[1,1024], index: 2, kind: input, shape index: {}]   ;;  %s2414_s4 = inlined_call_operand.vmem [shape: f32[1,128], index: 4, kind: input, shape index: {}]   ;;  %s2415_s5 = inlined_call_operand.vmem [shape: f32[1,128], index: 5, kind: output, shape index: {}]  }
   0x1   :  { %v142_v0 = vld [vmem:[%s2410_s1 + $0x3c8] sm:$0xff]  ;;  %v144_v1 = vld [vmem:[%s2410_s1 + $0x3d8] sm:$0xff]  ;;  %v141_v2 = vld [vmem:[%s2410_s1 + $0x3c0] sm:$0xff] }
   0x2   :  { %330 = vmatprep.subr.mxu0 %v142_v0  ;;  %401 = vmatprep.subr.mxu1 %v144_v1  ;;  %v143_v3 = vld [vmem:[%s2410_s1 + $0x3d0] sm:$0xff]  ;;  %v134_v4 = vld [vmem:[%s2410_s1 + $0x388] sm:$0xff]  ;;  %v136_v5 = vld [vmem:[%s2410_s1 + $0x398] sm:$0xff] }
   0x3   :  { %331 = vmatpush1.msra.mxu0 %v141_v2  ;;  %402 = vmatpush1.msra.mxu1 %v143_v3  ;;  %v133_v6 = vld [vmem:[%s2410_s1 + $0x380] sm:$0xff]  ;;  %v135_v7 = vld [vmem:[%s2410_s1 + $0x390] sm:$0xff]  ;;  %v126_v8 = vld [vmem:[%s2410_s1 + $0x348] sm:$0xff] }
   0x4   :  { %332 = vmatprep.subr.mxu0 %v134_v4  ;;  %403 = vmatprep.subr.mxu1 %v136_v5  ;;  %v128_v9 = vld [vmem:[%s2410_s1 + $0x358] sm:$0xff]  ;;  %v125_v10 = vld [vmem:[%s2410_s1 + $0x340] sm:$0xff]  ;;  %v127_v11 = vld [vmem:[%s2410_s1 + $0x350] sm:$0xff] }
   0x5   :  { %333 = vmatpush1.msra.mxu0 %v133_v6  ;;  %404 = vmatpush1.msra.mxu1 %v135_v7  ;;  %v118_v12 = vld [vmem:[%s2410_s1 + $0x308] sm:$0xff]  ;;  %v120_v13 = vld [vmem:[%s2410_s1 + $0x318] sm:$0xff]  ;;  %v117_v14 = vld [vmem:[%s2410_s1 + $0x300] sm:$0xff] }
   0x6   :  { %334 = vmatprep.subr.mxu0 %v126_v8  ;;  %405 = vmatprep.subr.mxu1 %v128_v9  ;;  %v119_v15 = vld [vmem:[%s2410_s1 + $0x310] sm:$0xff]  ;;  %v110_v16 = vld [vmem:[%s2410_s1 + $0x2c8] sm:$0xff]  ;;  %v112_v17 = vld [vmem:[%s2410_s1 + $0x2d8] sm:$0xff] }
   0x7   :  { %335 = vmatpush1.msra.mxu0 %v125_v10  ;;  %406 = vmatpush1.msra.mxu1 %v127_v11  ;;  %v109_v18 = vld [vmem:[%s2410_s1 + $0x2c0] sm:$0xff]  ;;  %v111_v19 = vld [vmem:[%s2410_s1 + $0x2d0] sm:$0xff]  ;;  %v102_v20 = vld [vmem:[%s2410_s1 + $0x288] sm:$0xff] }
   0x8   :  { %336 = vmatprep.subr.mxu0 %v118_v12  ;;  %407 = vmatprep.subr.mxu1 %v120_v13  ;;  %v104_v21 = vld [vmem:[%s2410_s1 + $0x298] sm:$0xff]  ;;  %v101_v22 = vld [vmem:[%s2410_s1 + $0x280] sm:$0xff]  ;;  %v103_v23 = vld [vmem:[%s2410_s1 + $0x290] sm:$0xff] }
   0x9   :  { %337 = vmatpush1.msra.mxu0 %v117_v14  ;;  %408 = vmatpush1.msra.mxu1 %v119_v15  ;;  %v94_v24 = vld [vmem:[%s2410_s1 + $0x248] sm:$0xff]  ;;  %v96_v25 = vld [vmem:[%s2410_s1 + $0x258] sm:$0xff]  ;;  %v93_v26 = vld [vmem:[%s2410_s1 + $0x240] sm:$0xff] }
   0xa   :  { %338 = vmatprep.subr.mxu0 %v110_v16  ;;  %409 = vmatprep.subr.mxu1 %v112_v17  ;;  %v95_v27 = vld [vmem:[%s2410_s1 + $0x250] sm:$0xff]  ;;  %v86_v28 = vld [vmem:[%s2410_s1 + $0x208] sm:$0xff]  ;;  %v88_v29 = vld [vmem:[%s2410_s1 + $0x218] sm:$0xff] }
   0xb   :  { %339 = vmatpush1.msra.mxu0 %v109_v18  ;;  %410 = vmatpush1.msra.mxu1 %v111_v19  ;;  %v85_v30 = vld [vmem:[%s2410_s1 + $0x200] sm:$0xff]  ;;  %v87_v31 = vld [vmem:[%s2410_s1 + $0x210] sm:$0xff]  ;;  %v78_v32 = vld [vmem:[%s2410_s1 + $0x1c8] sm:$0xff] }
   0xc   :  { %340 = vmatprep.subr.mxu0 %v102_v20  ;;  %411 = vmatprep.subr.mxu1 %v104_v21  ;;  %v80_v33 = vld [vmem:[%s2410_s1 + $0x1d8] sm:$0xff]  ;;  %v77_v34 = vld [vmem:[%s2410_s1 + $0x1c0] sm:$0xff]  ;;  %v79_v35 = vld [vmem:[%s2410_s1 + $0x1d0] sm:$0xff] }
   0xd   :  { %341 = vmatpush1.msra.mxu0 %v101_v22  ;;  %412 = vmatpush1.msra.mxu1 %v103_v23  ;;  %v70_v36 = vld [vmem:[%s2410_s1 + $0x188] sm:$0xff]  ;;  %v72_v37 = vld [vmem:[%s2410_s1 + $0x198] sm:$0xff]  ;;  %v69_v38 = vld [vmem:[%s2410_s1 + $0x180] sm:$0xff] }
   0xe   :  { %342 = vmatprep.subr.mxu0 %v94_v24  ;;  %413 = vmatprep.subr.mxu1 %v96_v25  ;;  %v71_v39 = vld [vmem:[%s2410_s1 + $0x190] sm:$0xff]  ;;  %v62_v40 = vld [vmem:[%s2410_s1 + $0x148] sm:$0xff]  ;;  %v64_v41 = vld [vmem:[%s2410_s1 + $0x158] sm:$0xff] }
   0xf   :  { %343 = vmatpush1.msra.mxu0 %v93_v26  ;;  %414 = vmatpush1.msra.mxu1 %v95_v27  ;;  %v61_v42 = vld [vmem:[%s2410_s1 + $0x140] sm:$0xff]  ;;  %v63_v43 = vld [vmem:[%s2410_s1 + $0x150] sm:$0xff]  ;;  %v54_v44 = vld [vmem:[%s2410_s1 + $0x108] sm:$0xff] }
  0x10   :  { %344 = vmatprep.subr.mxu0 %v86_v28  ;;  %415 = vmatprep.subr.mxu1 %v88_v29  ;;  %v56_v45 = vld [vmem:[%s2410_s1 + $0x118] sm:$0xff]  ;;  %v53_v46 = vld [vmem:[%s2410_s1 + $0x100] sm:$0xff]  ;;  %v55_v47 = vld [vmem:[%s2410_s1 + $0x110] sm:$0xff] }
  0x11   :  { %345 = vmatpush1.msra.mxu0 %v85_v30  ;;  %416 = vmatpush1.msra.mxu1 %v87_v31  ;;  %v46_v48 = vld [vmem:[%s2410_s1 + $0xc8] sm:$0xff]  ;;  %v48_v49 = vld [vmem:[%s2410_s1 + $0xd8] sm:$0xff]  ;;  %v45_v50 = vld [vmem:[%s2410_s1 + $0xc0] sm:$0xff] }
  0x12   :  { %346 = vmatprep.subr.mxu0 %v78_v32  ;;  %417 = vmatprep.subr.mxu1 %v80_v33  ;;  %v47_v51 = vld [vmem:[%s2410_s1 + $0xd0] sm:$0xff]  ;;  %v38_v52 = vld [vmem:[%s2410_s1 + $0x88] sm:$0xff]  ;;  %v40_v53 = vld [vmem:[%s2410_s1 + $0x98] sm:$0xff] }
  0x13   :  { %347 = vmatpush1.msra.mxu0 %v77_v34  ;;  %418 = vmatpush1.msra.mxu1 %v79_v35  ;;  %v37_v54 = vld [vmem:[%s2410_s1 + $0x80] sm:$0xff]  ;;  %v39_v55 = vld [vmem:[%s2410_s1 + $0x90] sm:$0xff]  ;;  %v30_v56 = vld [vmem:[%s2410_s1 + $0x48] sm:$0xff] }
  0x14   :  { %348 = vmatprep.subr.mxu0 %v70_v36  ;;  %419 = vmatprep.subr.mxu1 %v72_v37  ;;  %v32_v57 = vld [vmem:[%s2410_s1 + $0x58] sm:$0xff]  ;;  %v29_v58 = vld [vmem:[%s2410_s1 + $0x40] sm:$0xff]  ;;  %v31_v59 = vld [vmem:[%s2410_s1 + $0x50] sm:$0xff] }
  0x15   :  { %349 = vmatpush1.msra.mxu0 %v69_v38  ;;  %420 = vmatpush1.msra.mxu1 %v71_v39  ;;  %v22_v60 = vld [vmem:[%s2410_s1 + $0x8] sm:$0xff]  ;;  %v24_v61 = vld [vmem:[%s2410_s1 + $0x18] sm:$0xff]  ;;  %v21_v62 = vld [vmem:[%s2410_s1] sm:$0xff]  ;;  %v279_v38 = vlaneseq }
  0x16   :  { %350 = vmatprep.subr.mxu0 %v62_v40  ;;  %421 = vmatprep.subr.mxu1 %v64_v41  ;;  %v23_v63 = vld [vmem:[%s2410_s1 + $0x10] sm:$0xff]  ;;  %v270_v0 = vld [vmem:[%s2410_s1 + $0x7c8] sm:$0xff]  ;;  %v272_v1 = vld [vmem:[%s2410_s1 + $0x7d8] sm:$0xff] }
  0x17   :  { %351 = vmatpush1.msra.mxu0 %v61_v42  ;;  %422 = vmatpush1.msra.mxu1 %v63_v43  ;;  %v269_v2 = vld [vmem:[%s2410_s1 + $0x7c0] sm:$0xff]  ;;  %v271_v3 = vld [vmem:[%s2410_s1 + $0x7d0] sm:$0xff]  ;;  %v262_v4 = vld [vmem:[%s2410_s1 + $0x788] sm:$0xff] }
  0x18   :  { %352 = vmatprep.subr.mxu0 %v54_v44  ;;  %423 = vmatprep.subr.mxu1 %v56_v45  ;;  %v264_v5 = vld [vmem:[%s2410_s1 + $0x798] sm:$0xff]  ;;  %v261_v6 = vld [vmem:[%s2410_s1 + $0x780] sm:$0xff]  ;;  %v263_v7 = vld [vmem:[%s2410_s1 + $0x790] sm:$0xff] }
  0x19   :  { %353 = vmatpush1.msra.mxu0 %v53_v46  ;;  %424 = vmatpush1.msra.mxu1 %v55_v47  ;;  %v254_v8 = vld [vmem:[%s2410_s1 + $0x748] sm:$0xff]  ;;  %v256_v9 = vld [vmem:[%s2410_s1 + $0x758] sm:$0xff]  ;;  %v253_v10 = vld [vmem:[%s2410_s1 + $0x740] sm:$0xff]  ;;  %v1536_v47 = vshrl.u32 %v279_v38, 7 }
  0x1a   :  { %354 = vmatprep.subr.mxu0 %v46_v48  ;;  %425 = vmatprep.subr.mxu1 %v48_v49  ;;  %v255_v11 = vld [vmem:[%s2410_s1 + $0x750] sm:$0xff]  ;;  %v246_v12 = vld [vmem:[%s2410_s1 + $0x708] sm:$0xff]  ;;  %v248_v13 = vld [vmem:[%s2410_s1 + $0x718] sm:$0xff] }
  0x1b   :  { %355 = vmatpush1.msra.mxu0 %v45_v50  ;;  %426 = vmatpush1.msra.mxu1 %v47_v51  ;;  %v245_v14 = vld [vmem:[%s2410_s1 + $0x700] sm:$0xff]  ;;  %v247_v15 = vld [vmem:[%s2410_s1 + $0x710] sm:$0xff]  ;;  %v238_v16 = vld [vmem:[%s2410_s1 + $0x6c8] sm:$0xff] }
  0x1c   :  { %356 = vmatprep.subr.mxu0 %v38_v52  ;;  %427 = vmatprep.subr.mxu1 %v40_v53  ;;  %v240_v17 = vld [vmem:[%s2410_s1 + $0x6d8] sm:$0xff]  ;;  %v237_v18 = vld [vmem:[%s2410_s1 + $0x6c0] sm:$0xff]  ;;  %v239_v19 = vld [vmem:[%s2410_s1 + $0x6d0] sm:$0xff] }
  0x1d   :  { %357 = vmatpush1.msra.mxu0 %v37_v54  ;;  %428 = vmatpush1.msra.mxu1 %v39_v55  ;;  %v230_v20 = vld [vmem:[%s2410_s1 + $0x688] sm:$0xff]  ;;  %v232_v21 = vld [vmem:[%s2410_s1 + $0x698] sm:$0xff]  ;;  %v229_v22 = vld [vmem:[%s2410_s1 + $0x680] sm:$0xff] }
  0x1e   :  { %358 = vmatprep.subr.mxu0 %v30_v56  ;;  %429 = vmatprep.subr.mxu1 %v32_v57  ;;  %v231_v23 = vld [vmem:[%s2410_s1 + $0x690] sm:$0xff]  ;;  %v222_v24 = vld [vmem:[%s2410_s1 + $0x648] sm:$0xff]  ;;  %v224_v25 = vld [vmem:[%s2410_s1 + $0x658] sm:$0xff]  ;;  %v285_v56 = vsub.s32 1, %v1536_v47 }
  0x1f   :  { %359 = vmatpush1.msra.mxu0 %v29_v58  ;;  %430 = vmatpush1.msra.mxu1 %v31_v59  ;;  %v221_v26 = vld [vmem:[%s2410_s1 + $0x640] sm:$0xff]  ;;  %v223_v27 = vld [vmem:[%s2410_s1 + $0x650] sm:$0xff]  ;;  %v214_v28 = vld [vmem:[%s2410_s1 + $0x608] sm:$0xff] }
  0x20   :  { %360 = vmatprep.subr.mxu0 %v22_v60  ;;  %431 = vmatprep.subr.mxu1 %v24_v61  ;;  %v216_v29 = vld [vmem:[%s2410_s1 + $0x618] sm:$0xff]  ;;  %v213_v30 = vld [vmem:[%s2410_s1 + $0x600] sm:$0xff]  ;;  %v215_v31 = vld [vmem:[%s2410_s1 + $0x610] sm:$0xff] }
  0x21   :  { %361 = vmatpush1.msra.mxu0 %v21_v62  ;;  %432 = vmatpush1.msra.mxu1 %v23_v63  ;;  %v206_v32 = vld [vmem:[%s2410_s1 + $0x5c8] sm:$0xff]  ;;  %v208_v33 = vld [vmem:[%s2410_s1 + $0x5d8] sm:$0xff]  ;;  %v205_v34 = vld [vmem:[%s2410_s1 + $0x5c0] sm:$0xff]  ;;  %v281_v62 = vsub.s32 0, %v1536_v47 }
  0x22   :  { %362 = vmatprep.subr.mxu0 %v270_v0  ;;  %433 = vmatprep.subr.mxu1 %v272_v1  ;;  %v207_v35 = vld [vmem:[%s2410_s1 + $0x5d0] sm:$0xff]  ;;  %v198_v36 = vld [vmem:[%s2410_s1 + $0x588] sm:$0xff]  ;;  %v200_v37 = vld [vmem:[%s2410_s1 + $0x598] sm:$0xff] }
  0x23   :  { %363 = vmatpush2.msra.mxu0 %v269_v2  ;;  %434 = vmatpush2.msra.mxu1 %v271_v3  ;;  %v197_v39 = vld [vmem:[%s2410_s1 + $0x580] sm:$0xff]  ;;  %v199_v40 = vld [vmem:[%s2410_s1 + $0x590] sm:$0xff]  ;;  %v190_v41 = vld [vmem:[%s2410_s1 + $0x548] sm:$0xff] }
  0x24   :  { %364 = vmatprep.subr.mxu0 %v262_v4  ;;  %435 = vmatprep.subr.mxu1 %v264_v5  ;;  %v192_v42 = vld [vmem:[%s2410_s1 + $0x558] sm:$0xff]  ;;  %v189_v43 = vld [vmem:[%s2410_s1 + $0x540] sm:$0xff]  ;;  %v191_v44 = vld [vmem:[%s2410_s1 + $0x550] sm:$0xff] }
  0x25   :  { %365 = vmatpush2.msra.mxu0 %v261_v6  ;;  %436 = vmatpush2.msra.mxu1 %v263_v7  ;;  %v182_v45 = vld [vmem:[%s2410_s1 + $0x508] sm:$0xff]  ;;  %v184_v46 = vld [vmem:[%s2410_s1 + $0x518] sm:$0xff]  ;;  %v181_v48 = vld [vmem:[%s2410_s1 + $0x500] sm:$0xff] }
  0x26   :  { %366 = vmatprep.subr.mxu0 %v254_v8  ;;  %437 = vmatprep.subr.mxu1 %v256_v9  ;;  %v183_v49 = vld [vmem:[%s2410_s1 + $0x510] sm:$0xff]  ;;  %v174_v50 = vld [vmem:[%s2410_s1 + $0x4c8] sm:$0xff]  ;;  %v176_v51 = vld [vmem:[%s2410_s1 + $0x4d8] sm:$0xff] }
  0x27   :  { %367 = vmatpush2.msra.mxu0 %v253_v10  ;;  %438 = vmatpush2.msra.mxu1 %v255_v11  ;;  %v173_v52 = vld [vmem:[%s2410_s1 + $0x4c0] sm:$0xff]  ;;  %v175_v53 = vld [vmem:[%s2410_s1 + $0x4d0] sm:$0xff]  ;;  %v166_v54 = vld [vmem:[%s2410_s1 + $0x488] sm:$0xff] }
  0x28   :  { %368 = vmatprep.subr.mxu0 %v246_v12  ;;  %439 = vmatprep.subr.mxu1 %v248_v13  ;;  %v168_v55 = vld [vmem:[%s2410_s1 + $0x498] sm:$0xff]  ;;  %v165_v57 = vld [vmem:[%s2410_s1 + $0x480] sm:$0xff]  ;;  %v167_v58 = vld [vmem:[%s2410_s1 + $0x490] sm:$0xff] }
  0x29   :  { %369 = vmatpush2.msra.mxu0 %v245_v14  ;;  %440 = vmatpush2.msra.mxu1 %v247_v15  ;;  %v20_v59 = vld [vmem:[%s2411_s0] sm:$0x3]  ;;  %v158_v60 = vld [vmem:[%s2410_s1 + $0x448] sm:$0xff]  ;;  %v160_v61 = vld [vmem:[%s2410_s1 + $0x458] sm:$0xff] }
  0x2a   :  { %370 = vmatprep.subr.mxu0 %v238_v16  ;;  %441 = vmatprep.subr.mxu1 %v240_v17  ;;  %v157_v63 = vld [vmem:[%s2410_s1 + $0x440] sm:$0xff]  ;;  %v159_v0 = vld [vmem:[%s2410_s1 + $0x450] sm:$0xff]  ;;  %v150_v1 = vld [vmem:[%s2410_s1 + $0x408] sm:$0xff]  ;;  %v1593_v3 = vrot.slane %v20_v59, %v285_v56  ;;  %v1603_v6 = vrot.slane %v20_v59, %v281_v62 }
  0x2b   :  { %371 = vmatpush2.msra.mxu0 %v237_v18  ;;  %442 = vmatpush2.msra.mxu1 %v239_v19  ;;  %v152_v2 = vld [vmem:[%s2410_s1 + $0x418] sm:$0xff]  ;;  %v149_v4 = vld [vmem:[%s2410_s1 + $0x400] sm:$0xff]  ;;  %v151_v5 = vld [vmem:[%s2410_s1 + $0x410] sm:$0xff] }
  0x2c   :  { %372 = vmatprep.subr.mxu0 %v230_v20  ;;  %443 = vmatprep.subr.mxu1 %v232_v21  ;;  %v146_v7 = vld [vmem:[%s2410_s1 + $0x3e8] sm:$0xff]  ;;  %v148_v8 = vld [vmem:[%s2410_s1 + $0x3f8] sm:$0xff]  ;;  %v145_v9 = vld [vmem:[%s2410_s1 + $0x3e0] sm:$0xff] }
  0x2d   :  { %373 = vmatpush2.msra.mxu0 %v229_v22  ;;  %444 = vmatpush2.msra.mxu1 %v231_v23  ;;  %v147_v10 = vld [vmem:[%s2410_s1 + $0x3f0] sm:$0xff]  ;;  %v138_v11 = vld [vmem:[%s2410_s1 + $0x3a8] sm:$0xff]  ;;  %v140_v12 = vld [vmem:[%s2410_s1 + $0x3b8] sm:$0xff] }
  0x2e   :  { %374 = vmatprep.subr.mxu0 %v222_v24  ;;  %445 = vmatprep.subr.mxu1 %v224_v25  ;;  %v137_v13 = vld [vmem:[%s2410_s1 + $0x3a0] sm:$0xff]  ;;  %v139_v14 = vld [vmem:[%s2410_s1 + $0x3b0] sm:$0xff]  ;;  %v130_v15 = vld [vmem:[%s2410_s1 + $0x368] sm:$0xff] }
  0x2f   :  { %375 = vmatpush2.msra.mxu0 %v221_v26  ;;  %446 = vmatpush2.msra.mxu1 %v223_v27  ;;  %v132_v16 = vld [vmem:[%s2410_s1 + $0x378] sm:$0xff]  ;;  %v129_v17 = vld [vmem:[%s2410_s1 + $0x360] sm:$0xff]  ;;  %v131_v18 = vld [vmem:[%s2410_s1 + $0x370] sm:$0xff] }
  0x30   :  { %376 = vmatprep.subr.mxu0 %v214_v28  ;;  %447 = vmatprep.subr.mxu1 %v216_v29  ;;  %v122_v19 = vld [vmem:[%s2410_s1 + $0x328] sm:$0xff]  ;;  %v124_v20 = vld [vmem:[%s2410_s1 + $0x338] sm:$0xff]  ;;  %v121_v21 = vld [vmem:[%s2410_s1 + $0x320] sm:$0xff] }
  0x31   :  { %377 = vmatpush2.msra.mxu0 %v213_v30  ;;  %448 = vmatpush2.msra.mxu1 %v215_v31  ;;  %v123_v22 = vld [vmem:[%s2410_s1 + $0x330] sm:$0xff]  ;;  %v114_v23 = vld [vmem:[%s2410_s1 + $0x2e8] sm:$0xff]  ;;  %v116_v24 = vld [vmem:[%s2410_s1 + $0x2f8] sm:$0xff] }
  0x32   :  { %378 = vmatprep.subr.mxu0 %v206_v32  ;;  %449 = vmatprep.subr.mxu1 %v208_v33  ;;  %v113_v25 = vld [vmem:[%s2410_s1 + $0x2e0] sm:$0xff]  ;;  %v115_v26 = vld [vmem:[%s2410_s1 + $0x2f0] sm:$0xff]  ;;  %v106_v27 = vld [vmem:[%s2410_s1 + $0x2a8] sm:$0xff] }
  0x33   :  { %379 = vmatpush2.msra.mxu0 %v205_v34  ;;  %450 = vmatpush2.msra.mxu1 %v207_v35  ;;  %v108_v28 = vld [vmem:[%s2410_s1 + $0x2b8] sm:$0xff]  ;;  %v105_v29 = vld [vmem:[%s2410_s1 + $0x2a0] sm:$0xff]  ;;  %v107_v30 = vld [vmem:[%s2410_s1 + $0x2b0] sm:$0xff] }
  0x34   :  { %380 = vmatprep.subr.mxu0 %v198_v36  ;;  %451 = vmatprep.subr.mxu1 %v200_v37  ;;  %v98_v31 = vld [vmem:[%s2410_s1 + $0x268] sm:$0xff]  ;;  %v100_v32 = vld [vmem:[%s2410_s1 + $0x278] sm:$0xff]  ;;  %v97_v33 = vld [vmem:[%s2410_s1 + $0x260] sm:$0xff] }
  0x35   :  { %381 = vmatpush2.msra.mxu0 %v197_v39  ;;  %452 = vmatpush2.msra.mxu1 %v199_v40  ;;  %v99_v34 = vld [vmem:[%s2410_s1 + $0x270] sm:$0xff]  ;;  %v90_v35 = vld [vmem:[%s2410_s1 + $0x228] sm:$0xff]  ;;  %v92_v36 = vld [vmem:[%s2410_s1 + $0x238] sm:$0xff] }
  0x36   :  { %382 = vmatprep.subr.mxu0 %v190_v41  ;;  %453 = vmatprep.subr.mxu1 %v192_v42  ;;  %v89_v37 = vld [vmem:[%s2410_s1 + $0x220] sm:$0xff]  ;;  %v91_v38 = vld [vmem:[%s2410_s1 + $0x230] sm:$0xff]  ;;  %v82_v39 = vld [vmem:[%s2410_s1 + $0x1e8] sm:$0xff] }
  0x37   :  { %383 = vmatpush2.msra.mxu0 %v189_v43  ;;  %454 = vmatpush2.msra.mxu1 %v191_v44  ;;  %v84_v40 = vld [vmem:[%s2410_s1 + $0x1f8] sm:$0xff]  ;;  %v81_v41 = vld [vmem:[%s2410_s1 + $0x1e0] sm:$0xff]  ;;  %v83_v42 = vld [vmem:[%s2410_s1 + $0x1f0] sm:$0xff] }
  0x38   :  { %384 = vmatprep.subr.mxu0 %v182_v45  ;;  %455 = vmatprep.subr.mxu1 %v184_v46  ;;  %v74_v43 = vld [vmem:[%s2410_s1 + $0x1a8] sm:$0xff]  ;;  %v76_v44 = vld [vmem:[%s2410_s1 + $0x1b8] sm:$0xff]  ;;  %v73_v45 = vld [vmem:[%s2410_s1 + $0x1a0] sm:$0xff] }
  0x39   :  { %385 = vmatpush2.msra.mxu0 %v181_v48  ;;  %456 = vmatpush2.msra.mxu1 %v183_v49  ;;  %v75_v46 = vld [vmem:[%s2410_s1 + $0x1b0] sm:$0xff]  ;;  %v66_v48 = vld [vmem:[%s2410_s1 + $0x168] sm:$0xff]  ;;  %v68_v49 = vld [vmem:[%s2410_s1 + $0x178] sm:$0xff] }
  0x3a   :  { %386 = vmatprep.subr.mxu0 %v174_v50  ;;  %457 = vmatprep.subr.mxu1 %v176_v51  ;;  %v65_v50 = vld [vmem:[%s2410_s1 + $0x160] sm:$0xff]  ;;  %v67_v51 = vld [vmem:[%s2410_s1 + $0x170] sm:$0xff] }
  0x3b   :  { %387 = vmatpush2.msra.mxu0 %v173_v52  ;;  %458 = vmatpush2.msra.mxu1 %v175_v53  ;;  %v58_v52 = vld [vmem:[%s2410_s1 + $0x128] sm:$0xff]  ;;  %v60_v53 = vld [vmem:[%s2410_s1 + $0x138] sm:$0xff]  ;;  %v49_v59 = vld [vmem:[%s2410_s1 + $0xe0] sm:$0xff] }
  0x3c   :  { %388 = vmatprep.subr.mxu0 %v166_v54  ;;  %459 = vmatprep.subr.mxu1 %v168_v55  ;;  %v57_v54 = vld [vmem:[%s2410_s1 + $0x120] sm:$0xff]  ;;  %v59_v55 = vld [vmem:[%s2410_s1 + $0x130] sm:$0xff] }
  0x3d   :  { %389 = vmatpush2.msra.mxu0 %v165_v57  ;;  %460 = vmatpush2.msra.mxu1 %v167_v58  ;;  %v50_v57 = vld [vmem:[%s2410_s1 + $0xe8] sm:$0xff]  ;;  %v52_v58 = vld [vmem:[%s2410_s1 + $0xf8] sm:$0xff] }
  0x3e   :  { %390 = vmatprep.subr.mxu0 %v158_v60  ;;  %461 = vmatprep.subr.mxu1 %v160_v61  ;;  %v51_v60 = vld [vmem:[%s2410_s1 + $0xf0] sm:$0xff]  ;;  %v42_v61 = vld [vmem:[%s2410_s1 + $0xa8] sm:$0xff] }
  0x3f   :  { %391 = vmatpush2.msra.mxu0 %v157_v63  ;;  %462 = vmatpush2.msra.mxu1 %v159_v0  ;;  %v44_v63 = vld [vmem:[%s2410_s1 + $0xb8] sm:$0xff]  ;;  %v41_v0 = vld [vmem:[%s2410_s1 + $0xa0] sm:$0xff] }
  0x40   :  { %392 = vmatprep.subr.mxu0 %v150_v1  ;;  %463 = vmatprep.subr.mxu1 %v152_v2  ;;  %v43_v1 = vld [vmem:[%s2410_s1 + $0xb0] sm:$0xff]  ;;  %v34_v2 = vld [vmem:[%s2410_s1 + $0x68] sm:$0xff] }
  0x41   :  { %393 = vmatpush2.msra.mxu0 %v149_v4  ;;  %394 = vmatprep.mubr.f32.mxu0 %v1593_v3  ;;  %v36_v4 = vld [vmem:[%s2410_s1 + $0x78] sm:$0xff] }
  0x42   :  { %464 = vmatpush2.msra.mxu1 %v151_v5  ;;  %465 = vmatprep.mubr.f32.mxu1 %v1593_v3  ;;  %v33_v5 = vld [vmem:[%s2410_s1 + $0x60] sm:$0xff] }
  0x43   :  { %395 = vmatmul.mubr.f32.vlgmr.msra.gmra.mxu0 %v1603_v6  ;;  %466 = vmatmul.mubr.f32.vlgmr.msra.gmra.mxu1 %v1603_v6 }
  0x44   :  { %472 = vmatprep.subr.mxu0 %v146_v7  ;;  %543 = vmatprep.subr.mxu1 %v148_v8  ;;  %v35_v7 = vld [vmem:[%s2410_s1 + $0x70] sm:$0xff]  ;;  %v26_v8 = vld [vmem:[%s2410_s1 + $0x28] sm:$0xff] }
  0x45   :  { %473 = vmatpush1.msra.mxu0 %v145_v9  ;;  %544 = vmatpush1.msra.mxu1 %v147_v10  ;;  %v28_v9 = vld [vmem:[%s2410_s1 + $0x38] sm:$0xff]  ;;  %v25_v10 = vld [vmem:[%s2410_s1 + $0x20] sm:$0xff] }
  0x46   :  { %474 = vmatprep.subr.mxu0 %v138_v11  ;;  %545 = vmatprep.subr.mxu1 %v140_v12  ;;  %v27_v11 = vld [vmem:[%s2410_s1 + $0x30] sm:$0xff]  ;;  %v274_v12 = vld [vmem:[%s2410_s1 + $0x7e8] sm:$0xff] }
  0x47   :  { %475 = vmatpush1.msra.mxu0 %v137_v13  ;;  %546 = vmatpush1.msra.mxu1 %v139_v14  ;;  %v276_v13 = vld [vmem:[%s2410_s1 + $0x7f8] sm:$0xff]  ;;  %v273_v14 = vld [vmem:[%s2410_s1 + $0x7e0] sm:$0xff] }
  0x48   :  { %476 = vmatprep.subr.mxu0 %v130_v15  ;;  %547 = vmatprep.subr.mxu1 %v132_v16  ;;  %v275_v15 = vld [vmem:[%s2410_s1 + $0x7f0] sm:$0xff]  ;;  %v266_v16 = vld [vmem:[%s2410_s1 + $0x7a8] sm:$0xff] }
  0x49   :  { %477 = vmatpush1.msra.mxu0 %v129_v17  ;;  %548 = vmatpush1.msra.mxu1 %v131_v18  ;;  %v268_v17 = vld [vmem:[%s2410_s1 + $0x7b8] sm:$0xff]  ;;  %v265_v18 = vld [vmem:[%s2410_s1 + $0x7a0] sm:$0xff] }
  0x4a   :  { %478 = vmatprep.subr.mxu0 %v122_v19  ;;  %549 = vmatprep.subr.mxu1 %v124_v20  ;;  %v267_v19 = vld [vmem:[%s2410_s1 + $0x7b0] sm:$0xff]  ;;  %v258_v20 = vld [vmem:[%s2410_s1 + $0x768] sm:$0xff] }
  0x4b   :  { %479 = vmatpush1.msra.mxu0 %v121_v21  ;;  %550 = vmatpush1.msra.mxu1 %v123_v22  ;;  %v260_v21 = vld [vmem:[%s2410_s1 + $0x778] sm:$0xff]  ;;  %v257_v22 = vld [vmem:[%s2410_s1 + $0x760] sm:$0xff] }
  0x4c   :  { %480 = vmatprep.subr.mxu0 %v114_v23  ;;  %551 = vmatprep.subr.mxu1 %v116_v24  ;;  %v259_v23 = vld [vmem:[%s2410_s1 + $0x770] sm:$0xff]  ;;  %v250_v24 = vld [vmem:[%s2410_s1 + $0x728] sm:$0xff] }
  0x4d   :  { %481 = vmatpush1.msra.mxu0 %v113_v25  ;;  %552 = vmatpush1.msra.mxu1 %v115_v26  ;;  %v252_v25 = vld [vmem:[%s2410_s1 + $0x738] sm:$0xff]  ;;  %v249_v26 = vld [vmem:[%s2410_s1 + $0x720] sm:$0xff] }
  0x4e   :  { %482 = vmatprep.subr.mxu0 %v106_v27  ;;  %553 = vmatprep.subr.mxu1 %v108_v28  ;;  %v251_v27 = vld [vmem:[%s2410_s1 + $0x730] sm:$0xff]  ;;  %v242_v28 = vld [vmem:[%s2410_s1 + $0x6e8] sm:$0xff] }
  0x4f   :  { %483 = vmatpush1.msra.mxu0 %v105_v29  ;;  %554 = vmatpush1.msra.mxu1 %v107_v30  ;;  %v244_v29 = vld [vmem:[%s2410_s1 + $0x6f8] sm:$0xff]  ;;  %v241_v30 = vld [vmem:[%s2410_s1 + $0x6e0] sm:$0xff] }
  0x50   :  { %484 = vmatprep.subr.mxu0 %v98_v31  ;;  %555 = vmatprep.subr.mxu1 %v100_v32  ;;  %v243_v31 = vld [vmem:[%s2410_s1 + $0x6f0] sm:$0xff]  ;;  %v234_v32 = vld [vmem:[%s2410_s1 + $0x6a8] sm:$0xff] }
  0x51   :  { %485 = vmatpush1.msra.mxu0 %v97_v33  ;;  %556 = vmatpush1.msra.mxu1 %v99_v34  ;;  %v236_v33 = vld [vmem:[%s2410_s1 + $0x6b8] sm:$0xff]  ;;  %v233_v34 = vld [vmem:[%s2410_s1 + $0x6a0] sm:$0xff] }
  0x52   :  { %486 = vmatprep.subr.mxu0 %v90_v35  ;;  %557 = vmatprep.subr.mxu1 %v92_v36  ;;  %v235_v35 = vld [vmem:[%s2410_s1 + $0x6b0] sm:$0xff]  ;;  %v226_v36 = vld [vmem:[%s2410_s1 + $0x668] sm:$0xff] }
  0x53   :  { %487 = vmatpush1.msra.mxu0 %v89_v37  ;;  %558 = vmatpush1.msra.mxu1 %v91_v38  ;;  %v228_v37 = vld [vmem:[%s2410_s1 + $0x678] sm:$0xff]  ;;  %v225_v38 = vld [vmem:[%s2410_s1 + $0x660] sm:$0xff] }
  0x54   :  { %488 = vmatprep.subr.mxu0 %v82_v39  ;;  %559 = vmatprep.subr.mxu1 %v84_v40  ;;  %v227_v39 = vld [vmem:[%s2410_s1 + $0x670] sm:$0xff]  ;;  %v218_v40 = vld [vmem:[%s2410_s1 + $0x628] sm:$0xff] }
  0x55   :  { %489 = vmatpush1.msra.mxu0 %v81_v41  ;;  %560 = vmatpush1.msra.mxu1 %v83_v42  ;;  %v220_v41 = vld [vmem:[%s2410_s1 + $0x638] sm:$0xff]  ;;  %v217_v42 = vld [vmem:[%s2410_s1 + $0x620] sm:$0xff] }
  0x56   :  { %490 = vmatprep.subr.mxu0 %v74_v43  ;;  %561 = vmatprep.subr.mxu1 %v76_v44  ;;  %v219_v43 = vld [vmem:[%s2410_s1 + $0x630] sm:$0xff]  ;;  %v210_v44 = vld [vmem:[%s2410_s1 + $0x5e8] sm:$0xff] }
  0x57   :  { %491 = vmatpush1.msra.mxu0 %v73_v45  ;;  %562 = vmatpush1.msra.mxu1 %v75_v46  ;;  %v212_v45 = vld [vmem:[%s2410_s1 + $0x5f8] sm:$0xff]  ;;  %v209_v46 = vld [vmem:[%s2410_s1 + $0x5e0] sm:$0xff] }
  0x58   :  { %492 = vmatprep.subr.mxu0 %v66_v48  ;;  %563 = vmatprep.subr.mxu1 %v68_v49  ;;  %v211_v48 = vld [vmem:[%s2410_s1 + $0x5f0] sm:$0xff]  ;;  %v202_v49 = vld [vmem:[%s2410_s1 + $0x5a8] sm:$0xff] }
  0x59   :  { %493 = vmatpush1.msra.mxu0 %v65_v50  ;;  %564 = vmatpush1.msra.mxu1 %v67_v51  ;;  %v204_v50 = vld [vmem:[%s2410_s1 + $0x5b8] sm:$0xff]  ;;  %v201_v51 = vld [vmem:[%s2410_s1 + $0x5a0] sm:$0xff] }
  0x5a   :  { %494 = vmatprep.subr.mxu0 %v58_v52  ;;  %565 = vmatprep.subr.mxu1 %v60_v53  ;;  %v203_v52 = vld [vmem:[%s2410_s1 + $0x5b0] sm:$0xff]  ;;  %v194_v53 = vld [vmem:[%s2410_s1 + $0x568] sm:$0xff] }
  0x5b   :  { %495 = vmatpush1.msra.mxu0 %v57_v54  ;;  %566 = vmatpush1.msra.mxu1 %v59_v55  ;;  %v196_v54 = vld [vmem:[%s2410_s1 + $0x578] sm:$0xff]  ;;  %v193_v55 = vld [vmem:[%s2410_s1 + $0x560] sm:$0xff] }
  0x5c   :  { %496 = vmatprep.subr.mxu0 %v50_v57  ;;  %567 = vmatprep.subr.mxu1 %v52_v58  ;;  %v195_v57 = vld [vmem:[%s2410_s1 + $0x570] sm:$0xff]  ;;  %v186_v58 = vld [vmem:[%s2410_s1 + $0x528] sm:$0xff] }
  0x5d   :  { %497 = vmatpush1.msra.mxu0 %v49_v59  ;;  %568 = vmatpush1.msra.mxu1 %v51_v60  ;;  %v188_v59 = vld [vmem:[%s2410_s1 + $0x538] sm:$0xff]  ;;  %v185_v60 = vld [vmem:[%s2410_s1 + $0x520] sm:$0xff] }
  0x5e   :  { %498 = vmatprep.subr.mxu0 %v42_v61  ;;  %569 = vmatprep.subr.mxu1 %v44_v63  ;;  %v187_v61 = vld [vmem:[%s2410_s1 + $0x530] sm:$0xff]  ;;  %v178_v63 = vld [vmem:[%s2410_s1 + $0x4e8] sm:$0xff] }
  0x5f   :  { %499 = vmatpush1.msra.mxu0 %v41_v0  ;;  %570 = vmatpush1.msra.mxu1 %v43_v1  ;;  %v180_v0 = vld [vmem:[%s2410_s1 + $0x4f8] sm:$0xff]  ;;  %v177_v1 = vld [vmem:[%s2410_s1 + $0x4e0] sm:$0xff] }
  0x60   :  { %500 = vmatprep.subr.mxu0 %v34_v2  ;;  %571 = vmatprep.subr.mxu1 %v36_v4  ;;  %v179_v2 = vld [vmem:[%s2410_s1 + $0x4f0] sm:$0xff]  ;;  %v170_v4 = vld [vmem:[%s2410_s1 + $0x4a8] sm:$0xff] }
  0x61   :  { %501 = vmatpush1.msra.mxu0 %v33_v5  ;;  %572 = vmatpush1.msra.mxu1 %v35_v7  ;;  %v172_v5 = vld [vmem:[%s2410_s1 + $0x4b8] sm:$0xff]  ;;  %v169_v7 = vld [vmem:[%s2410_s1 + $0x4a0] sm:$0xff] }
  0x62   :  { %502 = vmatprep.subr.mxu0 %v26_v8  ;;  %573 = vmatprep.subr.mxu1 %v28_v9  ;;  %v171_v8 = vld [vmem:[%s2410_s1 + $0x4b0] sm:$0xff]  ;;  %v162_v9 = vld [vmem:[%s2410_s1 + $0x468] sm:$0xff] }
  0x63   :  { %503 = vmatpush1.msra.mxu0 %v25_v10  ;;  %574 = vmatpush1.msra.mxu1 %v27_v11  ;;  %v164_v10 = vld [vmem:[%s2410_s1 + $0x478] sm:$0xff]  ;;  %v161_v11 = vld [vmem:[%s2410_s1 + $0x460] sm:$0xff] }
  0x64   :  { %504 = vmatprep.subr.mxu0 %v274_v12  ;;  %575 = vmatprep.subr.mxu1 %v276_v13  ;;  %v163_v12 = vld [vmem:[%s2410_s1 + $0x470] sm:$0xff]  ;;  %v154_v13 = vld [vmem:[%s2410_s1 + $0x428] sm:$0xff] }
  0x65   :  { %505 = vmatpush2.msra.mxu0 %v273_v14  ;;  %576 = vmatpush2.msra.mxu1 %v275_v15  ;;  %v156_v14 = vld [vmem:[%s2410_s1 + $0x438] sm:$0xff]  ;;  %v153_v15 = vld [vmem:[%s2410_s1 + $0x420] sm:$0xff] }
  0x66   :  { %506 = vmatprep.subr.mxu0 %v266_v16  ;;  %577 = vmatprep.subr.mxu1 %v268_v17  ;;  %v155_v16 = vld [vmem:[%s2410_s1 + $0x430] sm:$0xff]  ;;  %v653_v17 = vld [vmem:[%s2412_s3 + $0xf8] sm:$0xff] }
  0x67   :  { %507 = vmatpush2.msra.mxu0 %v265_v18  ;;  %578 = vmatpush2.msra.mxu1 %v267_v19  ;;  %v685_v18 = vld [vmem:[%s2412_s3 + $0x1f8] sm:$0xff] }
  0x68   :  { %508 = vmatprep.subr.mxu0 %v258_v20  ;;  %579 = vmatprep.subr.mxu1 %v260_v21  ;;  %v637_v19 = vld [vmem:[%s2412_s3 + $0x78] sm:$0xff]  ;;  %v652_v21 = vld [vmem:[%s2412_s3 + $0xf0] sm:$0xff] }
  0x69   :  { %509 = vmatpush2.msra.mxu0 %v257_v22  ;;  %580 = vmatpush2.msra.mxu1 %v259_v23  ;;  %v669_v20 = vld [vmem:[%s2412_s3 + $0x178] sm:$0xff]  ;;  %v636_v22 = vld [vmem:[%s2412_s3 + $0x70] sm:$0xff] }
  0x6a   :  { %510 = vmatprep.subr.mxu0 %v250_v24  ;;  %581 = vmatprep.subr.mxu1 %v252_v25  ;;  %v668_v23 = vld [vmem:[%s2412_s3 + $0x170] sm:$0xff]  ;;  %v683_v24 = vld [vmem:[%s2412_s3 + $0x1e8] sm:$0xff] }
  0x6b   :  { %511 = vmatpush2.msra.mxu0 %v249_v26  ;;  %582 = vmatpush2.msra.mxu1 %v251_v27  ;;  %v635_v25 = vld [vmem:[%s2412_s3 + $0x68] sm:$0xff]  ;;  %v650_v27 = vld [vmem:[%s2412_s3 + $0xe0] sm:$0xff] }
  0x6c   :  { %512 = vmatprep.subr.mxu0 %v242_v28  ;;  %583 = vmatprep.subr.mxu1 %v244_v29  ;;  %v667_v26 = vld [vmem:[%s2412_s3 + $0x168] sm:$0xff]  ;;  %v682_v28 = vld [vmem:[%s2412_s3 + $0x1e0] sm:$0xff] }
  0x6d   :  { %513 = vmatpush2.msra.mxu0 %v241_v30  ;;  %584 = vmatpush2.msra.mxu1 %v243_v31  ;;  %v634_v29 = vld [vmem:[%s2412_s3 + $0x60] sm:$0xff]  ;;  %v649_v31 = vld [vmem:[%s2412_s3 + $0xd8] sm:$0xff] }
  0x6e   :  { %514 = vmatprep.subr.mxu0 %v234_v32  ;;  %585 = vmatprep.subr.mxu1 %v236_v33  ;;  %v666_v30 = vld [vmem:[%s2412_s3 + $0x160] sm:$0xff]  ;;  %v681_v32 = vld [vmem:[%s2412_s3 + $0x1d8] sm:$0xff] }
  0x6f   :  { %515 = vmatpush2.msra.mxu0 %v233_v34  ;;  %586 = vmatpush2.msra.mxu1 %v235_v35  ;;  %v633_v33 = vld [vmem:[%s2412_s3 + $0x58] sm:$0xff]  ;;  %v648_v35 = vld [vmem:[%s2412_s3 + $0xd0] sm:$0xff] }
  0x70   :  { %516 = vmatprep.subr.mxu0 %v226_v36  ;;  %587 = vmatprep.subr.mxu1 %v228_v37  ;;  %v665_v34 = vld [vmem:[%s2412_s3 + $0x158] sm:$0xff]  ;;  %v680_v36 = vld [vmem:[%s2412_s3 + $0x1d0] sm:$0xff] }
  0x71   :  { %517 = vmatpush2.msra.mxu0 %v225_v38  ;;  %588 = vmatpush2.msra.mxu1 %v227_v39  ;;  %v632_v37 = vld [vmem:[%s2412_s3 + $0x50] sm:$0xff]  ;;  %v647_v39 = vld [vmem:[%s2412_s3 + $0xc8] sm:$0xff] }
  0x72   :  { %518 = vmatprep.subr.mxu0 %v218_v40  ;;  %589 = vmatprep.subr.mxu1 %v220_v41  ;;  %v664_v38 = vld [vmem:[%s2412_s3 + $0x150] sm:$0xff]  ;;  %v679_v40 = vld [vmem:[%s2412_s3 + $0x1c8] sm:$0xff] }
  0x73   :  { %519 = vmatpush2.msra.mxu0 %v217_v42  ;;  %590 = vmatpush2.msra.mxu1 %v219_v43  ;;  %v631_v41 = vld [vmem:[%s2412_s3 + $0x48] sm:$0xff]  ;;  %v646_v43 = vld [vmem:[%s2412_s3 + $0xc0] sm:$0xff] }
  0x74   :  { %520 = vmatprep.subr.mxu0 %v210_v44  ;;  %591 = vmatprep.subr.mxu1 %v212_v45  ;;  %v663_v42 = vld [vmem:[%s2412_s3 + $0x148] sm:$0xff]  ;;  %v678_v44 = vld [vmem:[%s2412_s3 + $0x1c0] sm:$0xff] }
  0x75   :  { %521 = vmatpush2.msra.mxu0 %v209_v46  ;;  %592 = vmatpush2.msra.mxu1 %v211_v48  ;;  %v630_v45 = vld [vmem:[%s2412_s3 + $0x40] sm:$0xff]  ;;  %v645_v48 = vld [vmem:[%s2412_s3 + $0xb8] sm:$0xff] }
  0x76   :  { %522 = vmatprep.subr.mxu0 %v202_v49  ;;  %593 = vmatprep.subr.mxu1 %v204_v50  ;;  %v662_v46 = vld [vmem:[%s2412_s3 + $0x140] sm:$0xff]  ;;  %v677_v49 = vld [vmem:[%s2412_s3 + $0x1b8] sm:$0xff] }
  0x77   :  { %523 = vmatpush2.msra.mxu0 %v201_v51  ;;  %594 = vmatpush2.msra.mxu1 %v203_v52  ;;  %v629_v50 = vld [vmem:[%s2412_s3 + $0x38] sm:$0xff]  ;;  %v644_v52 = vld [vmem:[%s2412_s3 + $0xb0] sm:$0xff] }
  0x78   :  { %524 = vmatprep.subr.mxu0 %v194_v53  ;;  %595 = vmatprep.subr.mxu1 %v196_v54  ;;  %v661_v51 = vld [vmem:[%s2412_s3 + $0x138] sm:$0xff]  ;;  %v676_v53 = vld [vmem:[%s2412_s3 + $0x1b0] sm:$0xff] }
  0x79   :  { %525 = vmatpush2.msra.mxu0 %v193_v55  ;;  %596 = vmatpush2.msra.mxu1 %v195_v57  ;;  %v628_v54 = vld [vmem:[%s2412_s3 + $0x30] sm:$0xff]  ;;  %v643_v57 = vld [vmem:[%s2412_s3 + $0xa8] sm:$0xff] }
  0x7a   :  { %526 = vmatprep.subr.mxu0 %v186_v58  ;;  %597 = vmatprep.subr.mxu1 %v188_v59  ;;  %v660_v55 = vld [vmem:[%s2412_s3 + $0x130] sm:$0xff]  ;;  %v675_v58 = vld [vmem:[%s2412_s3 + $0x1a8] sm:$0xff] }
  0x7b   :  { %527 = vmatpush2.msra.mxu0 %v185_v60  ;;  %598 = vmatpush2.msra.mxu1 %v187_v61  ;;  %v627_v59 = vld [vmem:[%s2412_s3 + $0x28] sm:$0xff]  ;;  %v642_v61 = vld [vmem:[%s2412_s3 + $0xa0] sm:$0xff] }
  0x7c   :  { %528 = vmatprep.subr.mxu0 %v178_v63  ;;  %599 = vmatprep.subr.mxu1 %v180_v0  ;;  %v659_v60 = vld [vmem:[%s2412_s3 + $0x128] sm:$0xff]  ;;  %v674_v63 = vld [vmem:[%s2412_s3 + $0x1a0] sm:$0xff] }
  0x7d   :  { %529 = vmatpush2.msra.mxu0 %v177_v1  ;;  %600 = vmatpush2.msra.mxu1 %v179_v2  ;;  %v626_v0 = vld [vmem:[%s2412_s3 + $0x20] sm:$0xff]  ;;  %v641_v2 = vld [vmem:[%s2412_s3 + $0x98] sm:$0xff] }
  0x7e   :  { %530 = vmatprep.subr.mxu0 %v170_v4  ;;  %601 = vmatprep.subr.mxu1 %v172_v5  ;;  %v658_v1 = vld [vmem:[%s2412_s3 + $0x120] sm:$0xff]  ;;  %v673_v4 = vld [vmem:[%s2412_s3 + $0x198] sm:$0xff] }
  0x7f   :  { %531 = vmatpush2.msra.mxu0 %v169_v7  ;;  %602 = vmatpush2.msra.mxu1 %v171_v8  ;;  %v625_v5 = vld [vmem:[%s2412_s3 + $0x18] sm:$0xff]  ;;  %v640_v8 = vld [vmem:[%s2412_s3 + $0x90] sm:$0xff] }
  0x80   :  { %532 = vmatprep.subr.mxu0 %v162_v9  ;;  %603 = vmatprep.subr.mxu1 %v164_v10  ;;  %v657_v7 = vld [vmem:[%s2412_s3 + $0x118] sm:$0xff]  ;;  %v672_v9 = vld [vmem:[%s2412_s3 + $0x190] sm:$0xff] }
  0x81   :  { %533 = vmatpush2.msra.mxu0 %v161_v11  ;;  %604 = vmatpush2.msra.mxu1 %v163_v12  ;;  %v624_v10 = vld [vmem:[%s2412_s3 + $0x10] sm:$0xff]  ;;  %v639_v12 = vld [vmem:[%s2412_s3 + $0x88] sm:$0xff] }
  0x82   :  { %534 = vmatprep.subr.mxu0 %v154_v13  ;;  %605 = vmatprep.subr.mxu1 %v156_v14  ;;  %v656_v11 = vld [vmem:[%s2412_s3 + $0x110] sm:$0xff]  ;;  %v671_v13 = vld [vmem:[%s2412_s3 + $0x188] sm:$0xff] }
  0x83   :  { %535 = vmatpush2.msra.mxu0 %v153_v15  ;;  %536 = vmatprep.mubr.f32.mxu0 %v1593_v3  ;;  %v623_v14 = vld [vmem:[%s2412_s3 + $0x8] sm:$0xff] }
  0x84   :  { %606 = vmatpush2.msra.mxu1 %v155_v16  ;;  %607 = vmatprep.mubr.f32.mxu1 %v1593_v3  ;;  %v684_v3 = vld [vmem:[%s2412_s3 + $0x1f0] sm:$0xff]  ;;  %v655_v15 = vld [vmem:[%s2412_s3 + $0x108] sm:$0xff]  ;;  %v638_v16 = vld [vmem:[%s2412_s3 + $0x80] sm:$0xff] }
  0x85   :  { %537 = vmatmul.mubr.f32.vlgmr.msra.gmra.mxu0 %v1603_v6  ;;  %608 = vmatmul.mubr.f32.vlgmr.msra.gmra.mxu1 %v1603_v6  ;;  %v651_v6 = vld [vmem:[%s2412_s3 + $0xe8] sm:$0xff] }
  0x86   :  { %1036 = vmatprep.subr.mxu0 %v653_v17  ;;  %1071 = vmatprep.subr.mxu1 %v685_v18  ;;  %v670_v17 = vld [vmem:[%s2412_s3 + $0x180] sm:$0xff] }
  0x87   :  { %1037 = vmatpush3.msra.mxu0 %v637_v19  ;;  %1072 = vmatpush3.msra.mxu1 %v669_v20  ;;  %v622_v18 = vld [vmem:[%s2412_s3] sm:$0xff]  ;;  %v717_v20 = vld [vmem:[%s2412_s3 + $0x2f8] sm:$0xff] }
  0x88   :  { %1038 = vmatprep.subr.mxu0 %v652_v21  ;;  %1073 = vmatprep.subr.mxu1 %v684_v3  ;;  %v654_v19 = vld [vmem:[%s2412_s3 + $0x100] sm:$0xff]  ;;  %v749_v21 = vld [vmem:[%s2412_s3 + $0x3f8] sm:$0xff]  ;;  %v300_v3 = vsub.s32 2, %v1536_v47 }
  0x89   :  { %1039 = vmatpush3.msra.mxu0 %v636_v22  ;;  %1074 = vmatpush3.msra.mxu1 %v668_v23  ;;  %v2199_v22 = vld [vmem:[%s2413_s2] sm:$0xff]  ;;  %v304_v23 = vsub.s32 3, %v1536_v47 }
  0x8a   :  { %1040 = vmatprep.subr.mxu0 %v651_v6  ;;  %1075 = vmatprep.subr.mxu1 %v683_v24  ;;  %v301_v6 = vrot.slane %v2199_v22, %v300_v3  ;;  %v293_v24 = vrot.slane %v2199_v22, %v281_v62  ;;  %v701_v62 = vld [vmem:[%s2412_s3 + $0x278] sm:$0xff]  ;;  %v690_v3 = vld [vmem:[%s2412_s3 + $0x220] sm:$0xff] }
  0x8b   :  { %1041 = vmatpush3.msra.mxu0 %v635_v25  ;;  %1076 = vmatpush3.msra.mxu1 %v667_v26  ;;  %v297_v25 = vrot.slane %v2199_v22, %v285_v56  ;;  %v305_v26 = vrot.slane %v2199_v22, %v304_v23  ;;  %v733_v56 = vld [vmem:[%s2412_s3 + $0x378] sm:$0xff]  ;;  %v722_v23 = vld [vmem:[%s2412_s3 + $0x320] sm:$0xff] }
  0x8c   :  { %1042 = vmatprep.subr.mxu0 %v650_v27  ;;  %1077 = vmatprep.subr.mxu1 %v682_v28 }
  0x8d   :  { %1043 = vmatpush3.msra.mxu0 %v634_v29  ;;  %1078 = vmatpush3.msra.mxu1 %v666_v30 }
  0x8e   :  { %1044 = vmatprep.subr.mxu0 %v649_v31  ;;  %1079 = vmatprep.subr.mxu1 %v681_v32 }
  0x8f   :  { %1045 = vmatpush3.msra.mxu0 %v633_v33  ;;  %1080 = vmatpush3.msra.mxu1 %v665_v34 }
  0x90   :  { %1046 = vmatprep.subr.mxu0 %v648_v35  ;;  %1081 = vmatprep.subr.mxu1 %v680_v36 }
  0x91   :  { %1047 = vmatpush3.msra.mxu0 %v632_v37  ;;  %1082 = vmatpush3.msra.mxu1 %v664_v38 }
  0x92   :  { %1048 = vmatprep.subr.mxu0 %v647_v39  ;;  %1083 = vmatprep.subr.mxu1 %v679_v40  ;;  %v716_v39 = vld [vmem:[%s2412_s3 + $0x2f0] sm:$0xff] }
  0x93   :  { %1049 = vmatpush3.msra.mxu0 %v631_v41  ;;  %1084 = vmatpush3.msra.mxu1 %v663_v42  ;;  %v748_v40 = vld [vmem:[%s2412_s3 + $0x3f0] sm:$0xff] }
  0x94   :  { %1050 = vmatprep.subr.mxu0 %v646_v43  ;;  %1085 = vmatprep.subr.mxu1 %v678_v44  ;;  %v700_v41 = vld [vmem:[%s2412_s3 + $0x270] sm:$0xff]  ;;  %v715_v43 = vld [vmem:[%s2412_s3 + $0x2e8] sm:$0xff] }
  0x95   :  { %1051 = vmatpush3.msra.mxu0 %v630_v45  ;;  %1086 = vmatpush3.msra.mxu1 %v662_v46  ;;  %v732_v42 = vld [vmem:[%s2412_s3 + $0x370] sm:$0xff]  ;;  %v747_v44 = vld [vmem:[%s2412_s3 + $0x3e8] sm:$0xff] }
  0x96   :  { %1052 = vmatprep.subr.mxu0 %v645_v48  ;;  %1087 = vmatprep.subr.mxu1 %v677_v49  ;;  %v699_v45 = vld [vmem:[%s2412_s3 + $0x268] sm:$0xff]  ;;  %v714_v48 = vld [vmem:[%s2412_s3 + $0x2e0] sm:$0xff] }
  0x97   :  { %1053 = vmatpush3.msra.mxu0 %v629_v50  ;;  %1088 = vmatpush3.msra.mxu1 %v661_v51  ;;  %v731_v46 = vld [vmem:[%s2412_s3 + $0x368] sm:$0xff]  ;;  %v746_v49 = vld [vmem:[%s2412_s3 + $0x3e0] sm:$0xff] }
  0x98   :  { %1054 = vmatprep.subr.mxu0 %v644_v52  ;;  %1089 = vmatprep.subr.mxu1 %v676_v53  ;;  %v698_v50 = vld [vmem:[%s2412_s3 + $0x260] sm:$0xff]  ;;  %v713_v52 = vld [vmem:[%s2412_s3 + $0x2d8] sm:$0xff] }
  0x99   :  { %1055 = vmatpush3.msra.mxu0 %v628_v54  ;;  %1090 = vmatpush3.msra.mxu1 %v660_v55  ;;  %v730_v51 = vld [vmem:[%s2412_s3 + $0x360] sm:$0xff]  ;;  %v745_v53 = vld [vmem:[%s2412_s3 + $0x3d8] sm:$0xff] }
  0x9a   :  { %1056 = vmatprep.subr.mxu0 %v643_v57  ;;  %1091 = vmatprep.subr.mxu1 %v675_v58  ;;  %v697_v54 = vld [vmem:[%s2412_s3 + $0x258] sm:$0xff]  ;;  %v712_v57 = vld [vmem:[%s2412_s3 + $0x2d0] sm:$0xff] }
  0x9b   :  { %1057 = vmatpush3.msra.mxu0 %v627_v59  ;;  %1092 = vmatpush3.msra.mxu1 %v659_v60  ;;  %v729_v55 = vld [vmem:[%s2412_s3 + $0x358] sm:$0xff]  ;;  %v744_v58 = vld [vmem:[%s2412_s3 + $0x3d0] sm:$0xff] }
  0x9c   :  { %1058 = vmatprep.subr.mxu0 %v642_v61  ;;  %1093 = vmatprep.subr.mxu1 %v674_v63  ;;  %v696_v59 = vld [vmem:[%s2412_s3 + $0x250] sm:$0xff]  ;;  %v711_v61 = vld [vmem:[%s2412_s3 + $0x2c8] sm:$0xff] }
  0x9d   :  { %1059 = vmatpush3.msra.mxu0 %v626_v0  ;;  %1094 = vmatpush3.msra.mxu1 %v658_v1  ;;  %v728_v60 = vld [vmem:[%s2412_s3 + $0x350] sm:$0xff]  ;;  %v743_v63 = vld [vmem:[%s2412_s3 + $0x3c8] sm:$0xff] }
  0x9e   :  { %1060 = vmatprep.subr.mxu0 %v641_v2  ;;  %1095 = vmatprep.subr.mxu1 %v673_v4  ;;  %v695_v0 = vld [vmem:[%s2412_s3 + $0x248] sm:$0xff]  ;;  %v710_v2 = vld [vmem:[%s2412_s3 + $0x2c0] sm:$0xff] }
  0x9f   :  { %1061 = vmatpush3.msra.mxu0 %v625_v5  ;;  %1096 = vmatpush3.msra.mxu1 %v657_v7  ;;  %v727_v1 = vld [vmem:[%s2412_s3 + $0x348] sm:$0xff]  ;;  %v742_v4 = vld [vmem:[%s2412_s3 + $0x3c0] sm:$0xff] }
  0xa0   :  { %1062 = vmatprep.subr.mxu0 %v640_v8  ;;  %1097 = vmatprep.subr.mxu1 %v672_v9  ;;  %v694_v5 = vld [vmem:[%s2412_s3 + $0x240] sm:$0xff]  ;;  %v709_v8 = vld [vmem:[%s2412_s3 + $0x2b8] sm:$0xff] }
  0xa1   :  { %1063 = vmatpush3.msra.mxu0 %v624_v10  ;;  %1098 = vmatpush3.msra.mxu1 %v656_v11  ;;  %v726_v7 = vld [vmem:[%s2412_s3 + $0x340] sm:$0xff]  ;;  %v741_v9 = vld [vmem:[%s2412_s3 + $0x3b8] sm:$0xff] }
  0xa2   :  { %1064 = vmatprep.subr.mxu0 %v639_v12  ;;  %1099 = vmatprep.subr.mxu1 %v671_v13  ;;  %v693_v10 = vld [vmem:[%s2412_s3 + $0x238] sm:$0xff]  ;;  %v708_v12 = vld [vmem:[%s2412_s3 + $0x2b0] sm:$0xff] }
  0xa3   :  { %1065 = vmatpush3.msra.mxu0 %v623_v14  ;;  %1100 = vmatpush3.msra.mxu1 %v655_v15  ;;  %v725_v11 = vld [vmem:[%s2412_s3 + $0x338] sm:$0xff]  ;;  %v740_v13 = vld [vmem:[%s2412_s3 + $0x3b0] sm:$0xff] }
  0xa4   :  { %1066 = vmatprep.subr.mxu0 %v638_v16  ;;  %1101 = vmatprep.subr.mxu1 %v670_v17  ;;  %v692_v14 = vld [vmem:[%s2412_s3 + $0x230] sm:$0xff]  ;;  %v707_v16 = vld [vmem:[%s2412_s3 + $0x2a8] sm:$0xff] }
  0xa5   :  { %1067 = vmatpush3.msra.mxu0 %v622_v18  ;;  %1102 = vmatpush3.msra.mxu1 %v654_v19  ;;  %v724_v15 = vld [vmem:[%s2412_s3 + $0x330] sm:$0xff]  ;;  %v739_v17 = vld [vmem:[%s2412_s3 + $0x3a8] sm:$0xff] }
  0xa6   :  { %1106 = vmatprep.subr.mxu0 %v717_v20  ;;  %1141 = vmatprep.subr.mxu1 %v749_v21  ;;  %v691_v18 = vld [vmem:[%s2412_s3 + $0x228] sm:$0xff]  ;;  %v706_v20 = vld [vmem:[%s2412_s3 + $0x2a0] sm:$0xff] }
  0xa7   :  { %v723_v19 = vld [vmem:[%s2412_s3 + $0x328] sm:$0xff]  ;;  %v738_v21 = vld [vmem:[%s2412_s3 + $0x3a0] sm:$0xff] }
 0x103   :  { %v396_v27 = vpop.f32.mrf.mxu0  ;;  %v467_v28 = vpop.f32.mrf.mxu1 }
 0x104   :  { %v468_v29 = vadd.f32 %v467_v28, %v301_v6  ;;  %v397_v30 = vadd.f32 %v396_v27, %v293_v24  ;;  %v705_v6 = vld [vmem:[%s2412_s3 + $0x298] sm:$0xff]  ;;  %v704_v27 = vld [vmem:[%s2412_s3 + $0x290] sm:$0xff] }
 0x105   :  { %v398_v31 = vpop.f32.mrf.mxu0  ;;  %v469_v32 = vpop.f32.mrf.mxu1  ;;  %v737_v24 = vld [vmem:[%s2412_s3 + $0x398] sm:$0xff]  ;;  %v736_v28 = vld [vmem:[%s2412_s3 + $0x390] sm:$0xff] }
 0x106   :  { %v399_v33 = vadd.f32 %v398_v31, %v297_v25  ;;  %v470_v34 = vadd.f32 %v469_v32, %v305_v26  ;;  %v616_v35 = vmax.f32 %v468_v29, 0.0  ;;  %v614_v38 = vmax.f32 %v397_v30, 0.0  ;;  %v689_v25 = vld [vmem:[%s2412_s3 + $0x218] sm:$0xff]  ;;  %v688_v29 = vld [vmem:[%s2412_s3 + $0x210] sm:$0xff]  ;;  %v703_v31 = vld [vmem:[%s2412_s3 + $0x288] sm:$0xff] }
 0x107   :  { %v721_v26 = vld [vmem:[%s2412_s3 + $0x318] sm:$0xff]  ;;  %v720_v30 = vld [vmem:[%s2412_s3 + $0x310] sm:$0xff]  ;;  %v735_v32 = vld [vmem:[%s2412_s3 + $0x388] sm:$0xff] }
 0x108   :  { %v615_v36 = vmax.f32 %v399_v33, 0.0  ;;  %v617_v37 = vmax.f32 %v470_v34, 0.0  ;;  %v687_v33 = vld [vmem:[%s2412_s3 + $0x208] sm:$0xff] }
 0x109   :  { %v719_v34 = vld [vmem:[%s2412_s3 + $0x308] sm:$0xff] }
 0x10a   :  { %815 = vmatprep.mubr.f32.mxu0 %v615_v36  ;;  %885 = vmatprep.mubr.f32.mxu1 %v617_v37  ;;  %v734_v36 = vld [vmem:[%s2412_s3 + $0x380] sm:$0xff] }
 0x10b   :  { %816 = vmatmul.mubr.f32.vlgmr.msra.gmra.mxu0 %v614_v38  ;;  %886 = vmatmul.mubr.f32.vlgmr.msra.gmra.mxu1 %v616_v35  ;;  %v702_v35 = vld [vmem:[%s2412_s3 + $0x280] sm:$0xff] }
 0x10c   :  { %1107 = vmatpush3.msra.mxu0 %v701_v62  ;;  %1142 = vmatpush3.msra.mxu1 %v733_v56  ;;  %v686_v37 = vld [vmem:[%s2412_s3 + $0x200] sm:$0xff]  ;;  %v316_v62 = vsub.s32 6, %v1536_v47  ;;  %v308_v56 = vsub.s32 4, %v1536_v47 }
 0x10d   :  { %1108 = vmatprep.subr.mxu0 %v716_v39  ;;  %1143 = vmatprep.subr.mxu1 %v748_v40  ;;  %v718_v38 = vld [vmem:[%s2412_s3 + $0x300] sm:$0xff]  ;;  %v312_v39 = vsub.s32 5, %v1536_v47  ;;  %v320_v40 = vsub.s32 7, %v1536_v47 }
 0x10e   :  { %1109 = vmatpush3.msra.mxu0 %v700_v41  ;;  %1144 = vmatpush3.msra.mxu1 %v732_v42  ;;  %v317_v41 = vrot.slane %v2199_v22, %v316_v62  ;;  %v309_v42 = vrot.slane %v2199_v22, %v308_v56 }
 0x10f   :  { %1110 = vmatprep.subr.mxu0 %v715_v43  ;;  %1145 = vmatprep.subr.mxu1 %v747_v44  ;;  %v313_v43 = vrot.slane %v2199_v22, %v312_v39  ;;  %v321_v44 = vrot.slane %v2199_v22, %v320_v40 }
 0x110   :  { %1111 = vmatpush3.msra.mxu0 %v699_v45  ;;  %1146 = vmatpush3.msra.mxu1 %v731_v46 }
 0x111   :  { %1112 = vmatprep.subr.mxu0 %v714_v48  ;;  %1147 = vmatprep.subr.mxu1 %v746_v49 }
 0x112   :  { %1113 = vmatpush3.msra.mxu0 %v698_v50  ;;  %1148 = vmatpush3.msra.mxu1 %v730_v51 }
 0x113   :  { %1114 = vmatprep.subr.mxu0 %v713_v52  ;;  %1149 = vmatprep.subr.mxu1 %v745_v53 }
 0x114   :  { %1115 = vmatpush3.msra.mxu0 %v697_v54  ;;  %1150 = vmatpush3.msra.mxu1 %v729_v55 }
 0x115   :  { %1116 = vmatprep.subr.mxu0 %v712_v57  ;;  %1151 = vmatprep.subr.mxu1 %v744_v58 }
 0x116   :  { %1117 = vmatpush3.msra.mxu0 %v696_v59  ;;  %1152 = vmatpush3.msra.mxu1 %v728_v60 }
 0x117   :  { %1118 = vmatprep.subr.mxu0 %v711_v61  ;;  %1153 = vmatprep.subr.mxu1 %v743_v63  ;;  %v750_v61 = vld [vmem:[%s2414_s4] sm:$0x1] }
 0x118   :  { %1119 = vmatpush3.msra.mxu0 %v695_v0  ;;  %1154 = vmatpush3.msra.mxu1 %v727_v1 }
 0x119   :  { %1120 = vmatprep.subr.mxu0 %v710_v2  ;;  %1155 = vmatprep.subr.mxu1 %v742_v4 }
 0x11a   :  { %1121 = vmatpush3.msra.mxu0 %v694_v5  ;;  %1156 = vmatpush3.msra.mxu1 %v726_v7 }
 0x11b   :  { %1122 = vmatprep.subr.mxu0 %v709_v8  ;;  %1157 = vmatprep.subr.mxu1 %v741_v9 }
 0x11c   :  { %1123 = vmatpush3.msra.mxu0 %v693_v10  ;;  %1158 = vmatpush3.msra.mxu1 %v725_v11 }
 0x11d   :  { %1124 = vmatprep.subr.mxu0 %v708_v12  ;;  %1159 = vmatprep.subr.mxu1 %v740_v13 }
 0x11e   :  { %1125 = vmatpush3.msra.mxu0 %v692_v14  ;;  %1160 = vmatpush3.msra.mxu1 %v724_v15 }
 0x11f   :  { %1126 = vmatprep.subr.mxu0 %v707_v16  ;;  %1161 = vmatprep.subr.mxu1 %v739_v17 }
 0x120   :  { %1127 = vmatpush3.msra.mxu0 %v691_v18  ;;  %1162 = vmatpush3.msra.mxu1 %v723_v19 }
 0x121   :  { %1128 = vmatprep.subr.mxu0 %v706_v20  ;;  %1163 = vmatprep.subr.mxu1 %v738_v21 }
 0x122   :  { %1129 = vmatpush3.msra.mxu0 %v690_v3  ;;  %1164 = vmatpush3.msra.mxu1 %v722_v23 }
 0x123   :  { %1130 = vmatprep.subr.mxu0 %v705_v6  ;;  %1165 = vmatprep.subr.mxu1 %v737_v24 }
 0x124   :  { %1131 = vmatpush3.msra.mxu0 %v689_v25  ;;  %1166 = vmatpush3.msra.mxu1 %v721_v26 }
 0x125   :  { %1132 = vmatprep.subr.mxu0 %v704_v27  ;;  %1167 = vmatprep.subr.mxu1 %v736_v28 }
 0x126   :  { %1133 = vmatpush3.msra.mxu0 %v688_v29  ;;  %1168 = vmatpush3.msra.mxu1 %v720_v30 }
 0x127   :  { %1134 = vmatprep.subr.mxu0 %v703_v31  ;;  %1169 = vmatprep.subr.mxu1 %v735_v32 }
 0x128   :  { %1135 = vmatpush3.msra.mxu0 %v687_v33  ;;  %1170 = vmatpush3.msra.mxu1 %v719_v34 }
 0x129   :  { %1136 = vmatprep.subr.mxu0 %v702_v35  ;;  %1171 = vmatprep.subr.mxu1 %v734_v36 }
 0x12a   :  { %1137 = vmatpush3.msra.mxu0 %v686_v37  ;;  %1172 = vmatpush3.msra.mxu1 %v718_v38 }
 0x145   :  { %v538_v45 = vpop.f32.mrf.mxu0  ;;  %v609_v46 = vpop.f32.mrf.mxu1 }
 0x146   :  { %v610_v48 = vadd.f32 %v609_v46, %v317_v41  ;;  %v539_v49 = vadd.f32 %v538_v45, %v309_v42 }
 0x147   :  { %v540_v50 = vpop.f32.mrf.mxu0  ;;  %v611_v51 = vpop.f32.mrf.mxu1 }
 0x148   :  { %v541_v52 = vadd.f32 %v540_v50, %v313_v43  ;;  %v612_v53 = vadd.f32 %v611_v51, %v321_v44  ;;  %v620_v54 = vmax.f32 %v610_v48, 0.0  ;;  %v618_v47 = vmax.f32 %v539_v49, 0.0 }
 0x14a   :  { %v619_v55 = vmax.f32 %v541_v52, 0.0  ;;  %v621_v57 = vmax.f32 %v612_v53, 0.0 }
 0x14c   :  { %955 = vmatprep.mubr.f32.mxu0 %v619_v55  ;;  %1025 = vmatprep.mubr.f32.mxu1 %v621_v57 }
 0x14d   :  { %956 = vmatmul.mubr.f32.vlgmr.msra.gmra.mxu0 %v618_v47  ;;  %1026 = vmatmul.mubr.f32.vlgmr.msra.gmra.mxu1 %v620_v54 }
 0x1cb   :  { %v1068_v58 = vpop.f32.mrf.mxu0  ;;  %v1103_v60 = vpop.f32.mrf.mxu1 }
 0x1cd   :  { %v1069_v59 = vpop.f32.mrf.mxu0  ;;  %v1104_v63 = vpop.f32.mrf.mxu1 }
 0x1ce   :  { %v1070_v22 = vadd.f32 %v1069_v59, %v1068_v58  ;;  %v1105_v4 = vadd.f32 %v1104_v63, %v1103_v60 }
 0x1d0   :  { %v818_v0 = vadd.f32 %v1070_v22, %v750_v61 }
 0x1d2   :  { %v888_v8 = vadd.f32 %v1105_v4, %v818_v0 }
 0x20d   :  { %v1138_v1 = vpop.f32.mrf.mxu0  ;;  %v1173_v2 = vpop.f32.mrf.mxu1 }
 0x20f   :  { %v1139_v5 = vpop.f32.mrf.mxu0  ;;  %v1174_v7 = vpop.f32.mrf.mxu1 }
 0x210   :  { %v1140_v9 = vadd.f32 %v1139_v5, %v1138_v1  ;;  %v1175_v11 = vadd.f32 %v1174_v7, %v1173_v2 }
 0x212   :  { %v958_v10 = vadd.f32 %v1140_v9, %v888_v8 }
 0x214   :  { %v1028_v12 = vadd.f32 %v1175_v11, %v958_v10 }
 0x216   :  { %1031 = vst [vmem:[%s2415_s5] sm:$0x1] %v1028_v12 }

</bundles_post_ra>
